<compile_context>
chip_gen: v7x
topology: tpu7x:2x2x1
jax: 0.10.0
libtpu: 0.0.40
codegen_flags: <defaults>
</compile_context>

<pallas_src>
import functools
from math import sqrt

import jax
import jax.numpy as jnp
from jax.experimental import pallas as pl
from jax.experimental.pallas import tpu as pltpu

LANE = 128  # TPU lane width


def _round_up(x, m):
    return ((x + m - 1) // m) * m


def _build_mlp_kernel(num_linear):
    """Full MLP on one row-tile of z: MXU matmuls (bf16 in / f32 acc) + bias + ReLU."""

    def kernel(*refs):
        z_ref = refs[0]
        o_ref = refs[-1]
        wb_refs = refs[1:-1]  # alternating (w, b) refs, all fully resident in VMEM

        h = z_ref[...].astype(jnp.float32)
        for li in range(num_linear):
            w = wb_refs[2 * li][...]              # bf16 (fan_in, fan_out), lane-dense
            b = wb_refs[2 * li + 1][...]          # f32  (1, fan_out), broadcasts over rows
            h = jnp.dot(h.astype(jnp.bfloat16), w,
                        preferred_element_type=jnp.float32) + b
            if li < num_linear - 1:               # ReLU after every layer except the last
                h = jnp.maximum(h, 0.0)
        o_ref[...] = h.astype(o_ref.dtype)

    return kernel


def _pad_params_lane_dense(params, lane=LANE):
    """Zero-pad fan_out (and matching fan_in of the next layer) up to a lane multiple.

    Padded activation columns stay exactly zero through bias-add/ReLU, so the
    sliced [:, :out_dim] result is bit-identical to the unpadded computation.
    """
    padded = []
    for li, (w, b) in enumerate(params):
        fan_in, fan_out = w.shape
        fin_p = fan_in if li == 0 else _round_up(fan_in, lane)   # layer 0 keeps z's feature dim
        fout_p = _round_up(fan_out, lane)
        wp = jnp.zeros((fin_p, fout_p), w.dtype).at[:fan_in, :fan_out].set(w)
        bp = jnp.zeros((1, fout_p), b.dtype).at[:, :fan_out].set(b)
        padded.append((wp, bp))
    return padded


def synthesis_transform_pallas(z, params, *, tm=2048):
    """z: (N, input_dim) float32; params: list of (W, b), W (fan_in, fan_out), b (1, fan_out)."""
    N, D = z.shape
    num_linear = len(params)
    out_dim = params[-1][0].shape[1]          # true output width (3)

    padded = _pad_params_lane_dense(params)
    out_pad = padded[-1][0].shape[1]          # lane-dense output width (128)

    # Row tile: big by default (grid-step overhead amortization), clamped for
    # small problems; multiple of 8 to respect sublane tiling.
    tm = _round_up(min(tm, _round_up(N, 256)), 8)
    n_pad = _round_up(N, tm)
    z_p = z if n_pad == N else jnp.pad(z, ((0, n_pad - N), (0, 0)))

    in_specs = [pl.BlockSpec((tm, D), lambda i: (i, 0))]
    flat_params = []
    for (w, b) in padded:
        # Parameters are tiny: keep each as a single full block, resident across grid steps.
        in_specs.append(pl.BlockSpec(w.shape, lambda i: (0, 0)))
        in_specs.append(pl.BlockSpec(b.shape, lambda i: (0, 0)))
        flat_params += [w.astype(jnp.bfloat16), b.astype(jnp.float32)]

    flops = 2 * n_pad * sum(int(w.shape[0]) * int(w.shape[1]) for w, _ in padded)
    bytes_accessed = (
        z_p.size * z_p.dtype.itemsize
        + n_pad * out_pad * jnp.dtype(z.dtype).itemsize
        + sum(int(p.size) * p.dtype.itemsize for p in flat_params)
    )

    out = pl.pallas_call(
        _build_mlp_kernel(num_linear),
        out_shape=jax.ShapeDtypeStruct((n_pad, out_pad), z.dtype),
        grid_spec=pltpu.PrefetchScalarGridSpec(
            num_scalar_prefetch=0,
            grid=(n_pad // tm,),
            in_specs=in_specs,
            out_specs=pl.BlockSpec((tm, out_pad), lambda i: (i, 0)),
        ),
        compiler_params=pltpu.CompilerParams(
            dimension_semantics=("parallel",),
            vmem_limit_bytes=32 * 1024 * 1024,   # tiny footprint; safe on v5e/v6e/v7x
        ),
        cost_estimate=pl.CostEstimate(
            flops=flops, transcendentals=0, bytes_accessed=bytes_accessed),
    )(z_p, *flat_params)

    return out[:N, :out_dim]


def init_params(key, input_dim, dim_hidden, num_layers):
    """Deterministic PyTorch-style init: U(-1/sqrt(fan_in), 1/sqrt(fan_in))."""
    dims = [input_dim] + [dim_hidden] * max(num_layers - 1, 1) + [3]
    params = []
    for fan_in, fan_out in zip(dims[:-1], dims[1:]):
        key, kw, kb = jax.random.split(key, 3)
        bound = 1.0 / sqrt(fan_in)
        w = jax.random.uniform(kw, (fan_in, fan_out), jnp.float32, -bound, bound)
        b = jax.random.uniform(kb, (1, fan_out), jnp.float32, -bound, bound)
        params.append((w, b))
    return params


def synthesis_transform_ref(z, params):
    """Pure-JAX f32 reference of the PyTorch forward."""
    h = z
    for li, (w, b) in enumerate(params):
        h = h @ w + b
        if li < len(params) - 1:
            h = jnp.maximum(h, 0.0)
    return h


if __name__ == "__main__":
    key = jax.random.PRNGKey(0)

    input_dim = 32     # e.g. positional-encoding dimension of coordinates
    dim_hidden = 32
    num_layers = 3     # -> Linear(32,32) ReLU Linear(32,32) ReLU Linear(32,3)
    N = 1024           # number of coordinate points (rows)

    key, kz = jax.random.split(key)
    z = jax.random.normal(kz, (N, input_dim), jnp.float32)
    params = init_params(key, input_dim, dim_hidden, num_layers)

    # tm=512 here so the small demo still has 2 grid steps (exercises the
    # "parallel" axis / both v7x TensorCores); production sizes use the larger default.
    out = synthesis_transform_pallas(z, params, tm=512)
    out = jax.block_until_ready(out)

    ref = synthesis_transform_ref(z, params)
    assert out.shape == (N, 3)
    # bf16 matmul operands (f32 accumulate) vs. a pure-f32 reference: loosened tolerance.
    assert jnp.allclose(out, ref, atol=5e-2, rtol=5e-2), "mismatch vs JAX reference"

    print("KERNEL_OK")
</pallas_src>

<mosaic_0001>
module attributes {stable_mosaic.version = 11 : i64} {
  func.func @kernel(%arg0: i32, %arg1: memref<512x32xf32, #tpu.memory_space<vmem>>, %arg2: memref<32x128xbf16, #tpu.memory_space<vmem>>, %arg3: memref<1x128xf32, #tpu.memory_space<vmem>>, %arg4: memref<128x128xbf16, #tpu.memory_space<vmem>>, %arg5: memref<1x128xf32, #tpu.memory_space<vmem>>, %arg6: memref<128x128xbf16, #tpu.memory_space<vmem>>, %arg7: memref<1x128xf32, #tpu.memory_space<vmem>>, %arg8: memref<512x128xf32, #tpu.memory_space<vmem>>) attributes {dimension_semantics = [#tpu.dimension_semantics<parallel>], iteration_bounds = array<i64: 2>, scalar_prefetch = 0 : i64, scratch_operands = 0 : i64, tpu.core_type = #tpu.core_type<tc>, window_params = [{transform_indices = @transform_0, window_bounds = array<i64: 512, 32>}, {pipeline_mode = #tpu.pipeline_mode<synchronous>, transform_indices = @transform_1, window_bounds = array<i64: 32, 128>}, {pipeline_mode = #tpu.pipeline_mode<synchronous>, transform_indices = @transform_2, window_bounds = array<i64: 1, 128>}, {pipeline_mode = #tpu.pipeline_mode<synchronous>, transform_indices = @transform_3, window_bounds = array<i64: 128, 128>}, {pipeline_mode = #tpu.pipeline_mode<synchronous>, transform_indices = @transform_4, window_bounds = array<i64: 1, 128>}, {pipeline_mode = #tpu.pipeline_mode<synchronous>, transform_indices = @transform_5, window_bounds = array<i64: 128, 128>}, {pipeline_mode = #tpu.pipeline_mode<synchronous>, transform_indices = @transform_6, window_bounds = array<i64: 1, 128>}, {transform_indices = @transform_7, window_bounds = array<i64: 512, 128>}]} {
    %c0 = arith.constant 0 : index
    %c0_0 = arith.constant 0 : index
    %0 = vector.load %arg1[%c0, %c0_0] : memref<512x32xf32, #tpu.memory_space<vmem>>, vector<512x32xf32>
    %c0_1 = arith.constant 0 : index
    %c0_2 = arith.constant 0 : index
    %1 = vector.load %arg2[%c0_1, %c0_2] : memref<32x128xbf16, #tpu.memory_space<vmem>>, vector<32x128xbf16>
    %c0_3 = arith.constant 0 : index
    %c0_4 = arith.constant 0 : index
    %2 = vector.load %arg3[%c0_3, %c0_4] : memref<1x128xf32, #tpu.memory_space<vmem>>, vector<1x128xf32>
    %3 = arith.truncf %0 : vector<512x32xf32> to vector<512x32xbf16>
    %cst = arith.constant dense<0.000000e+00> : vector<512x128xf32>
    %4 = tpu.matmul %3, %1, %cst {dimension_numbers = #tpu.dot_dimension_numbers<[1], [0], [0], [1], [0, 0, 1, 1], [], []>} : vector<512x32xbf16>, vector<32x128xbf16>, vector<512x128xf32> -> vector<512x128xf32>
    %5 = vector.broadcast %2 : vector<1x128xf32> to vector<512x128xf32>
    %6 = arith.addf %4, %5 : vector<512x128xf32>
    %cst_5 = arith.constant 0.000000e+00 : f32
    %7 = vector.broadcast %cst_5 : f32 to vector<512x128xf32>
    %8 = arith.maximumf %6, %7 : vector<512x128xf32>
    %c0_6 = arith.constant 0 : index
    %c0_7 = arith.constant 0 : index
    %9 = vector.load %arg4[%c0_6, %c0_7] : memref<128x128xbf16, #tpu.memory_space<vmem>>, vector<128x128xbf16>
    %c0_8 = arith.constant 0 : index
    %c0_9 = arith.constant 0 : index
    %10 = vector.load %arg5[%c0_8, %c0_9] : memref<1x128xf32, #tpu.memory_space<vmem>>, vector<1x128xf32>
    %11 = arith.truncf %8 : vector<512x128xf32> to vector<512x128xbf16>
    %cst_10 = arith.constant dense<0.000000e+00> : vector<512x128xf32>
    %12 = tpu.matmul %11, %9, %cst_10 {dimension_numbers = #tpu.dot_dimension_numbers<[1], [0], [0], [1], [0, 0, 1, 1], [], []>} : vector<512x128xbf16>, vector<128x128xbf16>, vector<512x128xf32> -> vector<512x128xf32>
    %13 = vector.broadcast %10 : vector<1x128xf32> to vector<512x128xf32>
    %14 = arith.addf %12, %13 : vector<512x128xf32>
    %cst_11 = arith.constant 0.000000e+00 : f32
    %15 = vector.broadcast %cst_11 : f32 to vector<512x128xf32>
    %16 = arith.maximumf %14, %15 : vector<512x128xf32>
    %c0_12 = arith.constant 0 : index
    %c0_13 = arith.constant 0 : index
    %17 = vector.load %arg6[%c0_12, %c0_13] : memref<128x128xbf16, #tpu.memory_space<vmem>>, vector<128x128xbf16>
    %c0_14 = arith.constant 0 : index
    %c0_15 = arith.constant 0 : index
    %18 = vector.load %arg7[%c0_14, %c0_15] : memref<1x128xf32, #tpu.memory_space<vmem>>, vector<1x128xf32>
    %19 = arith.truncf %16 : vector<512x128xf32> to vector<512x128xbf16>
    %cst_16 = arith.constant dense<0.000000e+00> : vector<512x128xf32>
    %20 = tpu.matmul %19, %17, %cst_16 {dimension_numbers = #tpu.dot_dimension_numbers<[1], [0], [0], [1], [0, 0, 1, 1], [], []>} : vector<512x128xbf16>, vector<128x128xbf16>, vector<512x128xf32> -> vector<512x128xf32>
    %21 = vector.broadcast %18 : vector<1x128xf32> to vector<512x128xf32>
    %22 = arith.addf %20, %21 : vector<512x128xf32>
    %c0_17 = arith.constant 0 : index
    %c0_18 = arith.constant 0 : index
    %23 = vector.load %arg8[%c0_17, %c0_18] : memref<512x128xf32, #tpu.memory_space<vmem>>, vector<512x128xf32>
    tpu.vector_store %arg8[%c0_17, %c0_18], %22 {strides = array<i32>} : memref<512x128xf32, #tpu.memory_space<vmem>>, vector<512x128xf32>,
    return
  }
  func.func @transform_0(%arg0: i32) -> (i32, i32) {
    %c0_i32 = arith.constant 0 : i32
    %c0_i32_0 = arith.constant 0 : i32
    return %arg0, %c0_i32 : i32, i32
  }
  func.func @transform_1(%arg0: i32) -> (i32, i32) {
    %c0_i32 = arith.constant 0 : i32
    %c0_i32_0 = arith.constant 0 : i32
    %c0_i32_1 = arith.constant 0 : i32
    return %c0_i32, %c0_i32_0 : i32, i32
  }
  func.func @transform_2(%arg0: i32) -> (i32, i32) {
    %c0_i32 = arith.constant 0 : i32
    %c0_i32_0 = arith.constant 0 : i32
    %c0_i32_1 = arith.constant 0 : i32
    return %c0_i32, %c0_i32_0 : i32, i32
  }
  func.func @transform_3(%arg0: i32) -> (i32, i32) {
    %c0_i32 = arith.constant 0 : i32
    %c0_i32_0 = arith.constant 0 : i32
    %c0_i32_1 = arith.constant 0 : i32
    return %c0_i32, %c0_i32_0 : i32, i32
  }
  func.func @transform_4(%arg0: i32) -> (i32, i32) {
    %c0_i32 = arith.constant 0 : i32
    %c0_i32_0 = arith.constant 0 : i32
    %c0_i32_1 = arith.constant 0 : i32
    return %c0_i32, %c0_i32_0 : i32, i32
  }
  func.func @transform_5(%arg0: i32) -> (i32, i32) {
    %c0_i32 = arith.constant 0 : i32
    %c0_i32_0 = arith.constant 0 : i32
    %c0_i32_1 = arith.constant 0 : i32
    return %c0_i32, %c0_i32_0 : i32, i32
  }
  func.func @transform_6(%arg0: i32) -> (i32, i32) {
    %c0_i32 = arith.constant 0 : i32
    %c0_i32_0 = arith.constant 0 : i32
    %c0_i32_1 = arith.constant 0 : i32
    return %c0_i32, %c0_i32_0 : i32, i32
  }
  func.func @transform_7(%arg0: i32) -> (i32, i32) {
    %c0_i32 = arith.constant 0 : i32
    %c0_i32_0 = arith.constant 0 : i32
    return %arg0, %c0_i32 : i32, i32
  }
}

</mosaic_0001>

<bundles_post_ra>
// kernel: tpu_custom_call.1
= control target key start
LH: loop header
LB: loop body
LE: loop exit
PB: predicated region body
PF: predicated region fallthrough
CT: control target
= control target key end

     0   :  { %12 = vsyncpa [#allocation3], 0  ;;  %s2978_s0 = inlined_call_operand.vmem [shape: f32[1024,32], index: 0, kind: input, shape index: {}]   ;;  %s2979_s1 = inlined_call_operand.vmem [shape: bf16[32,128], index: 1, kind: input, shape index: {}]   ;;  %s2980_s2 = inlined_call_operand.vmem [shape: f32[1,128], index: 2, kind: input, shape index: {}]   ;;  %s2981_s3 = inlined_call_operand.vmem [shape: bf16[128,128], index: 3, kind: input, shape index: {}]   ;;  %s2982_s4 = inlined_call_operand.vmem [shape: f32[1,128], index: 4, kind: input, shape index: {}]   ;;  %s2983_s5 = inlined_call_operand.vmem [shape: bf16[128,128], index: 5, kind: input, shape index: {}]   ;;  %s2984_s6 = inlined_call_operand.vmem [shape: f32[1,128], index: 6, kind: input, shape index: {}]   ;;  %s2985_s7 = inlined_call_operand.hbm [shape: f32[1024,128], index: 7, kind: output, shape index: {}]  }
   0x1   :  { %14 = vsyncpa [#allocation3 + $0x1], 0  ;;  %s2416_s24 = smov 0   ;;  %s2418_s25 = smov 0  }
   0x2   :  { %s2420_s26 = smov 0   ;;  %s2422_s27 = smov 0  }
   0x3 LB: > { %s2437_s28 = sadd.s32 4294967295, %s2371_s27   ;;  %s1838_s29 = sadd.s32 4294967294, %s2371_s27   ;;  %s2371_s27 = sphi %s2422_s27, %s2991_s27   ;;  %s2367_s26 = sphi %s2420_s26, %s2990_s26   ;;  %s2363_s25 = sphi %s2418_s25, %s2989_s25   ;;  %s2359_s24 = sphi %s2416_s24, %s2988_s24  }
   0x4   : > { %s2441_s30 = sadd.s32 1, %s2371_s27   ;;  %s179_s8 = sadd.s32 1, %s2367_s26 }
   0x5   : > { %s176_s9 = ssub.s32 %s2371_s27, %s2441_s30  ;;  %p189_p0 = scmp.ne.s32.totalorder %s2367_s26, %s2363_s25 }
   0x6   : > { %p177_p1 = scmp.eq.s32.totalorder %s176_s9, 0  ;;  %p190_p2 = scmp.eq.s32.totalorder %s2437_s28, 1 }
   0x7   : > { %p195_p3 = scmp.ne.s32.totalorder %s2363_s25, %s2359_s24  ;;  %p196_p4 = scmp.eq.s32.totalorder %s1838_s29, 1 }
   0x8   : > { %s2452_s10 = scalar_select %p177_p1, %s2367_s26, %s179_s8  }
   0x9   : > { %p2454_p5 = por %p190_p2, %p189_p0  ;;  %p2458_p6 = por %p196_p4, %p195_p3 }
   0xa   : > { %p1841_p7 = scmp.ge.s32.totalorder %s2371_s27, 1  ;;  %p241_p8 = scmp.lt.s32.totalorder %s2371_s27, 3 }
   0xc   : > { %p242_p9 = pnand %p1841_p7, %p241_p8 }
   0xd   : > { %v2291_v0 = vld [vmem:[%s2979_s1] sm:$0xff] (!%p242_p9)   ;;  %s1843_s15 = sshll.u32 (!%p242_p9), %s2437_s28, 6  ;;  %v2292_v1 = vld [vmem:[%s2979_s1 + $0x8] sm:$0xff] (!%p242_p9)   ;;  %vm400_vm0 = vcmask (!%p242_p9), 261120   ;;  %v2295_v38 = vld [vmem:[%s2981_s3 + $0x10] sm:$0xff] (!%p242_p9)   ;;  %s270_s16 = sand.u32 (!%p242_p9), 1, %s2363_s25  }
   0xe   : > { %245 = sbr.rel (%p242_p9) target bundleno = 824 (0x338), region = 48  ;;  %p274_p10 = scmp.lt.s32.totalorder (!%p242_p9), %s1843_s15, 127  ;;  %2018 = vmatprep.subr.bf16.mxu0 (!%p242_p9), %v2291_v0  ;;  %2246 = vmatprep.subr.bf16.mxu1 (!%p242_p9), %v2291_v0  ;;  %v2293_v2 = vld [vmem:[%s2981_s3] sm:$0xff] (!%p242_p9)   ;;  %v2294_v29 = vld [vmem:[%s2981_s3 + $0x8] sm:$0xff] (!%p242_p9)   ;;  %v2296_v40 = vld [vmem:[%s2981_s3 + $0x18] sm:$0xff] (!%p242_p9)  }
   0xf   : > { %2019 = vmatpush3.bf16.msra.mxu0 (!%p242_p9), %v2291_v0  ;;  %2248 = vmatpush3.bf16.msra.mxu1 (!%p242_p9), %v2291_v0  ;;  %v2297_v50 = vld [vmem:[%s2981_s3 + $0x20] sm:$0xff] (!%p242_p9)   ;;  %v2298_v57 = vld [vmem:[%s2981_s3 + $0x28] sm:$0xff] (!%p242_p9)   ;;  %s1842_s17 = sshll.u32 (!%p242_p9), %s270_s16, 9  ;;  %s1903_s21 = sshll.u32 (!%p242_p9), %s2437_s28, 13 }
  0x10   : > { %2020 = vmatprep.subr.bf16.mxu0 (!%p242_p9), %v2292_v1  ;;  %2247 = vmatprep.subr.bf16.mxu1 (!%p242_p9), %v2292_v1  ;;  %s2927_s9 = scalar_lea.hbm (!%p242_p9), %s2985_s7, %s1903_s21  ;;  %s2937_s28 = scalar_lea.sflag (!%p242_p9), [#allocation3], %s270_s16 }
  0x11   : > { %s2373_s13 = smov (!%p242_p9), [#allocation2]  }
  0x12   : > { %s2313_s14 = sshll.u32 (!%p242_p9), %s2373_s13, 4  ;;  %s2314_s14 = int_to_ptr.vmem [resolvable:$false] %s2313_s14 }
  0x13   : > { %2021 = vmatpush3.bf16.msra.mxu0 (!%p242_p9), %v2292_v1  ;;  %2249 = vmatpush3.bf16.msra.mxu1 (!%p242_p9), %v2292_v1 }
  0x14   : > { %2086 = vmatprep.subr.bf16.mxu1 (!%p242_p9), %v2293_v2 }
  0x15   : > { %s2993_s15 = smov (!%p274_p10, %s1843_s15), 127 }
  0x16   : > { %s1844_s20 = sshll.u32 %s2993_s15, 3  ;;  %s2315_s15 = scalar_lea.vmem %s2314_s14, 16384 }
  0x17   : > { %s2477_s23 = scalar_lea.vmem %s2978_s0, %s1844_s20  ;;  %s2798_s20 = scalar_lea.vmem [#allocation2], %s1842_s17 }
  0x18   : > { %v281_v3 = vld [vmem:[%s2477_s23] sm:$0xff]  ;;  %v282_v4 = vld [vmem:[%s2477_s23 + $0x8] sm:$0xff]  ;;  %v283_v5 = vld [vmem:[%s2477_s23 + $0x10] sm:$0xff]  ;;  %s1776_s22 = sshll.u32 %s2798_s20, 4  ;;  %s2929_s22 = int_to_ptr.vmem [resolvable:$true] %s1776_s22 }
  0x19   : > { %v350_v6 = vpack.c.bf16 %v282_v4, %v281_v3  ;;  %v284_v7 = vld [vmem:[%s2477_s23 + $0x18] sm:$0xff]  ;;  %v285_v8 = vld [vmem:[%s2477_s23 + $0x20] sm:$0xff]  ;;  %v286_v9 = vld [vmem:[%s2477_s23 + $0x28] sm:$0xff]  ;;  %p2316_p0 = scmp.lt.s32.totalorder %s2929_s22, %s2314_s14 }
  0x1a   : > { %v351_v10 = vpack.c.bf16 %v284_v7, %v283_v5  ;;  %v352_v11 = vpack.c.bf16 %v286_v9, %v285_v8  ;;  %v287_v12 = vld [vmem:[%s2477_s23 + $0x30] sm:$0xff]  ;;  %v288_v13 = vld [vmem:[%s2477_s23 + $0x38] sm:$0xff]  ;;  %v289_v14 = vld [vmem:[%s2477_s23 + $0x40] sm:$0xff] }
  0x1b   : > { %2022 = vmatprep.mubr.msk.bf16.mxu0 %vm400_vm0, %v350_v6  ;;  %v290_v15 = vld [vmem:[%s2477_s23 + $0x48] sm:$0xff]  ;;  %v353_v16 = vpack.c.bf16 %v288_v13, %v287_v12  ;;  %v313_v18 = vld [vmem:[%s2477_s23 + $0x100] sm:$0xff]  ;;  %v315_v20 = vld [vmem:[%s2477_s23 + $0x110] sm:$0xff] }
  0x1c   : > { %2023 = vmatmul.mubr.msk.bf16.vlgmr.msra.gmra.mrb[0].mxu0 %vm400_vm0, %v351_v10  ;;  %v354_v17 = vpack.c.bf16 %v290_v15, %v289_v14  ;;  %v314_v19 = vld [vmem:[%s2477_s23 + $0x108] sm:$0xff]  ;;  %v316_v21 = vld [vmem:[%s2477_s23 + $0x118] sm:$0xff]  ;;  %v317_v24 = vld [vmem:[%s2477_s23 + $0x120] sm:$0xff] }
  0x1d   : > { %2026 = vmatprep.mubr.msk.bf16.mxu0 %vm400_vm0, %v352_v11  ;;  %v366_v22 = vpack.c.bf16 %v314_v19, %v313_v18  ;;  %v367_v23 = vpack.c.bf16 %v316_v21, %v315_v20  ;;  %v318_v25 = vld [vmem:[%s2477_s23 + $0x128] sm:$0xff]  ;;  %v291_v26 = vld [vmem:[%s2477_s23 + $0x50] sm:$0xff]  ;;  %v292_v27 = vld [vmem:[%s2477_s23 + $0x58] sm:$0xff] }
  0x1e   : > { %v368_v28 = vpack.c.bf16 %v318_v25, %v317_v24  ;;  %v293_v30 = vld [vmem:[%s2477_s23 + $0x60] sm:$0xff]  ;;  %v294_v31 = vld [vmem:[%s2477_s23 + $0x68] sm:$0xff]  ;;  %v355_v32 = vpack.c.bf16 %v292_v27, %v291_v26  ;;  %v319_v33 = vld [vmem:[%s2477_s23 + $0x130] sm:$0xff] }
  0x1f   : > { %2054 = vmatprep.mubr.msk.bf16.mxu1 %vm400_vm0, %v366_v22  ;;  %v320_v34 = vld [vmem:[%s2477_s23 + $0x138] sm:$0xff]  ;;  %v356_v35 = vpack.c.bf16 %v294_v31, %v293_v30  ;;  %v321_v36 = vld [vmem:[%s2477_s23 + $0x140] sm:$0xff]  ;;  %v322_v37 = vld [vmem:[%s2477_s23 + $0x148] sm:$0xff] }
  0x20   : > { %2055 = vmatmul.mubr.msk.bf16.vlgmr.msra.gmra.mrb[0].mxu1 %vm400_vm0, %v367_v23  ;;  %v369_v39 = vpack.c.bf16 %v320_v34, %v319_v33  ;;  %v295_v41 = vld [vmem:[%s2477_s23 + $0x70] sm:$0xff]  ;;  %v296_v42 = vld [vmem:[%s2477_s23 + $0x78] sm:$0xff]  ;;  %v297_v43 = vld [vmem:[%s2477_s23 + $0x80] sm:$0xff]  ;;  %v370_v44 = vpack.c.bf16 %v322_v37, %v321_v36 }
  0x21   : > { %2058 = vmatprep.mubr.msk.bf16.mxu1 %vm400_vm0, %v368_v28  ;;  %2087 = vmatpush3.bf16.msra.mxu1 %v2293_v2  ;;  %v298_v45 = vld [vmem:[%s2477_s23 + $0x88] sm:$0xff]  ;;  %v323_v46 = vld [vmem:[%s2477_s23 + $0x150] sm:$0xff]  ;;  %v324_v47 = vld [vmem:[%s2477_s23 + $0x158] sm:$0xff]  ;;  %v357_v51 = vpack.c.bf16 %v296_v42, %v295_v41 }
  0x22   : > { %2088 = vmatprep.subr.bf16.mxu1 %v2294_v29  ;;  %v325_v48 = vld [vmem:[%s2477_s23 + $0x160] sm:$0xff]  ;;  %v326_v49 = vld [vmem:[%s2477_s23 + $0x168] sm:$0xff]  ;;  %v358_v52 = vpack.c.bf16 %v298_v45, %v297_v43  ;;  %v299_v53 = vld [vmem:[%s2477_s23 + $0x90] sm:$0xff]  ;;  %v371_v54 = vpack.c.bf16 %v324_v47, %v323_v46 }
  0x23   : > { %v372_v55 = vpack.c.bf16 %v326_v49, %v325_v48  ;;  %v300_v56 = vld [vmem:[%s2477_s23 + $0x98] sm:$0xff]  ;;  %v301_v58 = vld [vmem:[%s2477_s23 + $0xa0] sm:$0xff]  ;;  %v302_v59 = vld [vmem:[%s2477_s23 + $0xa8] sm:$0xff] }
  0x24   : > { %2027 = vmatmul.mubr.msk.bf16.gmra.mrb[4].mxu0 %vm400_vm0, %v353_v16  ;;  %v359_v60 = vpack.c.bf16 %v300_v56, %v299_v53  ;;  %v327_v61 = vld [vmem:[%s2477_s23 + $0x170] sm:$0xff]  ;;  %v328_v62 = vld [vmem:[%s2477_s23 + $0x178] sm:$0xff]  ;;  %v360_v63 = vpack.c.bf16 %v302_v59, %v301_v58  ;;  %v329_v0 = vld [vmem:[%s2477_s23 + $0x180] sm:$0xff] }
  0x25   : > { %2030 = vmatprep.mubr.msk.bf16.mxu0 %vm400_vm0, %v354_v17  ;;  %2089 = vmatpush3.bf16.msra.mxu1 %v2294_v29  ;;  %v330_v1 = vld [vmem:[%s2477_s23 + $0x188] sm:$0xff]  ;;  %v2299_v2 = vld [vmem:[%s2981_s3 + $0x30] sm:$0xff]   ;;  %v373_v3 = vpack.c.bf16 %v328_v62, %v327_v61  ;;  %v304_v6 = vld [vmem:[%s2477_s23 + $0xb8] sm:$0xff] }
  0x26   : > { %2090 = vmatprep.subr.bf16.mxu1 %v2295_v38  ;;  %v374_v4 = vpack.c.bf16 %v330_v1, %v329_v0  ;;  %v303_v5 = vld [vmem:[%s2477_s23 + $0xb0] sm:$0xff]  ;;  %v305_v7 = vld [vmem:[%s2477_s23 + $0xc0] sm:$0xff]  ;;  %v306_v8 = vld [vmem:[%s2477_s23 + $0xc8] sm:$0xff] }
  0x27   : > { %v361_v9 = vpack.c.bf16 %v304_v6, %v303_v5  ;;  %v331_v10 = vld [vmem:[%s2477_s23 + $0x190] sm:$0xff]  ;;  %v332_v11 = vld [vmem:[%s2477_s23 + $0x198] sm:$0xff]  ;;  %v362_v12 = vpack.c.bf16 %v306_v8, %v305_v7  ;;  %v333_v13 = vld [vmem:[%s2477_s23 + $0x1a0] sm:$0xff] }
  0x28   : > { %2059 = vmatmul.mubr.msk.bf16.gmra.mrb[4].mxu1 %vm400_vm0, %v369_v39  ;;  %v334_v14 = vld [vmem:[%s2477_s23 + $0x1a8] sm:$0xff]  ;;  %v375_v15 = vpack.c.bf16 %v332_v11, %v331_v10  ;;  %v307_v17 = vld [vmem:[%s2477_s23 + $0xd0] sm:$0xff]  ;;  %v308_v18 = vld [vmem:[%s2477_s23 + $0xd8] sm:$0xff] }
  0x29   : > { %2062 = vmatprep.mubr.msk.bf16.mxu1 %vm400_vm0, %v370_v44  ;;  %2091 = vmatpush3.bf16.msra.mxu1 %v2295_v38  ;;  %v376_v16 = vpack.c.bf16 %v334_v14, %v333_v13  ;;  %v309_v19 = vld [vmem:[%s2477_s23 + $0xe0] sm:$0xff]  ;;  %v310_v20 = vld [vmem:[%s2477_s23 + $0xe8] sm:$0xff]  ;;  %v363_v21 = vpack.c.bf16 %v308_v18, %v307_v17  ;;  %v335_v22 = vld [vmem:[%s2477_s23 + $0x1b0] sm:$0xff] }
  0x2a   : > { %2092 = vmatprep.subr.bf16.mxu1 %v2296_v40  ;;  %v336_v23 = vld [vmem:[%s2477_s23 + $0x1b8] sm:$0xff]  ;;  %v364_v24 = vpack.c.bf16 %v310_v20, %v309_v19  ;;  %v337_v25 = vld [vmem:[%s2477_s23 + $0x1c0] sm:$0xff]  ;;  %v338_v26 = vld [vmem:[%s2477_s23 + $0x1c8] sm:$0xff] }
  0x2b   : > { %v377_v27 = vpack.c.bf16 %v336_v23, %v335_v22  ;;  %v378_v28 = vpack.c.bf16 %v338_v26, %v337_v25  ;;  %v311_v29 = vld [vmem:[%s2477_s23 + $0xf0] sm:$0xff]  ;;  %v312_v30 = vld [vmem:[%s2477_s23 + $0xf8] sm:$0xff]  ;;  %v341_v34 = vld [vmem:[%s2477_s23 + $0x1e0] sm:$0xff] }
  0x2c   : > { %2031 = vmatmul.mubr.msk.bf16.gmra.mrb[8].mxu0 %vm400_vm0, %v355_v32  ;;  %v365_v31 = vpack.c.bf16 %v312_v30, %v311_v29  ;;  %v339_v32 = vld [vmem:[%s2477_s23 + $0x1d0] sm:$0xff]  ;;  %v340_v33 = vld [vmem:[%s2477_s23 + $0x1d8] sm:$0xff]  ;;  %v2599_v42 = vld [vmem:[%s2980_s2] ss:$0 sm:$0xff] }
  0x2d   : > { %2034 = vmatprep.mubr.msk.bf16.mxu0 %vm400_vm0, %v356_v35  ;;  %2093 = vmatpush3.bf16.msra.mxu1 %v2296_v40  ;;  %v342_v35 = vld [vmem:[%s2477_s23 + $0x1e8] sm:$0xff]  ;;  %v379_v36 = vpack.c.bf16 %v340_v33, %v339_v32  ;;  %v343_v38 = vld [vmem:[%s2477_s23 + $0x1f0] sm:$0xff]  ;;  %v344_v39 = vld [vmem:[%s2477_s23 + $0x1f8] sm:$0xff]  ;;  %s2309_s23 = scalar_lea.vmem %s2929_s22, 8192 }
  0x2e   : > { %2094 = vmatprep.subr.bf16.mxu1 %v2297_v50  ;;  %v380_v37 = vpack.c.bf16 %v342_v35, %v341_v34  ;;  %v381_v40 = vpack.c.bf16 %v344_v39, %v343_v38  ;;  %v2300_v41 = vld [vmem:[%s2981_s3 + $0x38] sm:$0xff]   ;;  %v2303_v58 = vld [vmem:[%s2983_s5 + $0x10] sm:$0xff]   ;;  %v2305_v20 = vld [vmem:[%s2983_s5 + $0x20] sm:$0xff]   ;;  %p2310_p11 = scmp.ne.s32.totalorder %s2929_s22, %s2309_s23  ;;  %p2317_p1 = scmp.lt.s32.totalorder %s2315_s15, %s2309_s23 }
  0x2f   : > { %v2306_v34 = vld [vmem:[%s2983_s5 + $0x28] sm:$0xff]  }
  0x30   : > { %2063 = vmatmul.mubr.msk.bf16.gmra.mrb[8].mxu1 %vm400_vm0, %v371_v54  ;;  %p2311_p12 = pnand %p2310_p11, %p2454_p5  ;;  %p2318_p2 = por %p2317_p1, %p2316_p0 }
  0x31   : > { %2066 = vmatprep.mubr.msk.bf16.mxu1 %vm400_vm0, %v372_v55  ;;  %2095 = vmatpush3.bf16.msra.mxu1 %v2297_v50  ;;  %v2301_v50 = vld [vmem:[%s2983_s5] sm:$0xff]  }
  0x32   : > { %2096 = vmatprep.subr.bf16.mxu1 %v2298_v57  ;;  %2166 = vmatprep.subr.bf16.mxu0 %v2301_v50  ;;  %p2312_p13 = pneg %p2311_p12 }
  0x33   : > { %2167 = vmatpush3.bf16.msra.mxu0 %v2301_v50 }
  0x34   : > { %2035 = vmatmul.mubr.msk.bf16.gmra.mrb[12].mxu0 %vm400_vm0, %v357_v51  ;;  %v2302_v51 = vld [vmem:[%s2983_s5 + $0x8] sm:$0xff]   ;;  %p2319_p3 = pnand %p2318_p2, %p2312_p13 }
  0x35   : > { %2038 = vmatprep.mubr.msk.bf16.mxu0 %vm400_vm0, %v358_v52  ;;  %2097 = vmatpush3.bf16.msra.mxu1 %v2298_v57 }
  0x36   : > { %2098 = vmatprep.subr.bf16.mxu1 %v2299_v2  ;;  %2168 = vmatprep.subr.bf16.mxu0 %v2302_v51 }
  0x37   : > { %2169 = vmatpush3.bf16.msra.mxu0 %v2302_v51  ;;  %v2307_v51 = vld [vmem:[%s2983_s5 + $0x30] sm:$0xff]  }
  0x38   : > { %2067 = vmatmul.mubr.msk.bf16.gmra.mrb[12].mxu1 %vm400_vm0, %v373_v3  ;;  %2170 = vmatprep.subr.bf16.mxu0 %v2303_v58 }
  0x39   : > { %2070 = vmatprep.mubr.msk.bf16.mxu1 %vm400_vm0, %v374_v4  ;;  %2099 = vmatpush3.bf16.msra.mxu1 %v2299_v2  ;;  %v2304_v4 = vld [vmem:[%s2983_s5 + $0x18] sm:$0xff]  }
  0x3a   : > { %2100 = vmatprep.subr.bf16.mxu1 %v2300_v41 }
  0x3b   : > { %2171 = vmatpush3.bf16.msra.mxu0 %v2303_v58 }
  0x3c   : > { %2039 = vmatmul.mubr.msk.bf16.gmra.mrb[16].mxu0 %vm400_vm0, %v359_v60  ;;  %2172 = vmatprep.subr.bf16.mxu0 %v2304_v4 }
  0x3d   : > { %2042 = vmatprep.mubr.msk.bf16.mxu0 %vm400_vm0, %v360_v63  ;;  %2101 = vmatpush3.bf16.msra.mxu1 %v2300_v41 }
  0x3f   : > { %2173 = vmatpush3.bf16.msra.mxu0 %v2304_v4 }
  0x40   : > { %2071 = vmatmul.mubr.msk.bf16.gmra.mrb[16].mxu1 %vm400_vm0, %v375_v15  ;;  %2174 = vmatprep.subr.bf16.mxu0 %v2305_v20 }
  0x41   : > { %2074 = vmatprep.mubr.msk.bf16.mxu1 %vm400_vm0, %v376_v16 }
  0x43   : > { %2175 = vmatpush3.bf16.msra.mxu0 %v2305_v20 }
  0x44   : > { %2043 = vmatmul.mubr.msk.bf16.gmra.mrb[20].mxu0 %vm400_vm0, %v361_v9  ;;  %2176 = vmatprep.subr.bf16.mxu0 %v2306_v34 }
  0x45   : > { %2046 = vmatprep.mubr.msk.bf16.mxu0 %vm400_vm0, %v362_v12 }
  0x47   : > { %2177 = vmatpush3.bf16.msra.mxu0 %v2306_v34 }
  0x48   : > { %2075 = vmatmul.mubr.msk.bf16.gmra.mrb[20].mxu1 %vm400_vm0, %v377_v27  ;;  %2178 = vmatprep.subr.bf16.mxu0 %v2307_v51 }
  0x49   : > { %2078 = vmatprep.mubr.msk.bf16.mxu1 %vm400_vm0, %v378_v28 }
  0x4b   : > { %2179 = vmatpush3.bf16.msra.mxu0 %v2307_v51 }
  0x4c   : > { %2047 = vmatmul.mubr.msk.bf16.gmra.mrb[24].mxu0 %vm400_vm0, %v363_v21 }
  0x4d   : > { %2050 = vmatprep.mubr.msk.bf16.mxu0 %vm400_vm0, %v364_v24 }
  0x50   : > { %2079 = vmatmul.mubr.msk.bf16.gmra.mrb[24].mxu1 %vm400_vm0, %v379_v36 }
  0x51   : > { %2082 = vmatprep.mubr.msk.bf16.mxu1 %vm400_vm0, %v380_v37 }
  0x54   : > { %2051 = vmatmul.mubr.msk.bf16.gmra.mrb[28].mxu0 %vm400_vm0, %v365_v31 }
  0x58   : > { %2083 = vmatmul.mubr.msk.bf16.gmra.mrb[28].mxu1 %vm400_vm0, %v381_v40 }
  0xef   : > { %v2024_v43 = vpop.f32.mrb[0].mxu0 }
  0xf0   : > { %v540_v44 = vadd.f32 %v2024_v43, %v2599_v42  ;;  %v531_v45 = vpop.f32.mrb[1].mxu0 }
  0xf1   : > { %v532_v46 = vadd.f32 %v2599_v42, %v531_v45  ;;  %v2025_v47 = vpop.f32.mrb[2].mxu0 }
  0xf2   : > { %v543_v48 = vadd.f32 %v2025_v47, %v2599_v42  ;;  %v534_v49 = vpop.f32.mrb[3].mxu0  ;;  %v788_v53 = vmax.f32 %v540_v44, 0.0 }
  0xf3   : > { %v535_v52 = vadd.f32 %v2599_v42, %v534_v49  ;;  %v786_v55 = vmax.f32 %v532_v46, 0.0  ;;  %v2056_v3 = vpop.f32.mrb[0].mxu1 }
  0xf4   : > { %v789_v54 = vmax.f32 %v543_v48, 0.0  ;;  %v668_v6 = vadd.f32 %v2056_v3, %v2599_v42  ;;  %v659_v7 = vpop.f32.mrb[1].mxu1 }
  0xf5   : > { %v787_v56 = vmax.f32 %v535_v52, 0.0  ;;  %v660_v10 = vadd.f32 %v2599_v42, %v659_v7  ;;  %v2057_v11 = vpop.f32.mrb[2].mxu1 }
  0xf6   : > { %v868_v57 = vpack.c.bf16 %v789_v54, %v788_v53  ;;  %v820_v14 = vmax.f32 %v668_v6, 0.0  ;;  %v671_v15 = vadd.f32 %v2057_v11, %v2599_v42  ;;  %v662_v16 = vpop.f32.mrb[3].mxu1 }
  0xf7   : > { %v867_v59 = vpack.c.bf16 %v787_v56, %v786_v55  ;;  %v2028_v60 = vpop.f32.mrb[4].mxu0  ;;  %v818_v18 = vmax.f32 %v660_v10, 0.0  ;;  %v663_v19 = vadd.f32 %v2599_v42, %v662_v16 }
  0xf8   : > { %v556_v61 = vadd.f32 %v2028_v60, %v2599_v42  ;;  %v547_v62 = vpop.f32.mrb[5].mxu0  ;;  %v821_v23 = vmax.f32 %v671_v15, 0.0 }
  0xf9   : > { %v548_v63 = vadd.f32 %v2599_v42, %v547_v62  ;;  %v2029_v0 = vpop.f32.mrb[6].mxu0  ;;  %2102 = vmatprep.mubr.bf16.mxu1 %v867_v59  ;;  %v819_v26 = vmax.f32 %v663_v19, 0.0 }
  0xfa   : > { %v559_v1 = vadd.f32 %v2029_v0, %v2599_v42  ;;  %v550_v2 = vpop.f32.mrb[7].mxu0  ;;  %2103 = vmatmul.mubr.bf16.vlgmr.msra.gmra.mrb[32].mxu1 %v868_v57  ;;  %v792_v8 = vmax.f32 %v556_v61, 0.0  ;;  %v2630_v29 = vpack.c.bf16 %v821_v23, %v820_v14 }
  0xfb   : > { %v551_v5 = vadd.f32 %v2599_v42, %v550_v2  ;;  %v790_v12 = vmax.f32 %v548_v63, 0.0  ;;  %v2633_v32 = vpack.c.bf16 %v819_v26, %v818_v18  ;;  %v2060_v33 = vpop.f32.mrb[4].mxu1 }
  0xfc   : > { %v793_v9 = vmax.f32 %v559_v1, 0.0  ;;  %v684_v36 = vadd.f32 %v2060_v33, %v2599_v42  ;;  %v675_v37 = vpop.f32.mrb[5].mxu1 }
  0xfd   : > { %v791_v13 = vmax.f32 %v551_v5, 0.0  ;;  %v676_v40 = vadd.f32 %v2599_v42, %v675_v37  ;;  %v2061_v41 = vpop.f32.mrb[6].mxu1 }
  0xfe   : > { %v870_v17 = vpack.c.bf16 %v793_v9, %v792_v8  ;;  %v824_v45 = vmax.f32 %v684_v36, 0.0  ;;  %v687_v46 = vadd.f32 %v2061_v41, %v2599_v42  ;;  %v678_v47 = vpop.f32.mrb[7].mxu1 }
  0xff   : > { %v869_v21 = vpack.c.bf16 %v791_v13, %v790_v12  ;;  %v2032_v22 = vpop.f32.mrb[8].mxu0  ;;  %v822_v49 = vmax.f32 %v676_v40, 0.0  ;;  %v679_v50 = vadd.f32 %v2599_v42, %v678_v47 }
 0x100   : > { %v572_v24 = vadd.f32 %v2032_v22, %v2599_v42  ;;  %v563_v25 = vpop.f32.mrb[9].mxu0  ;;  %v825_v54 = vmax.f32 %v687_v46, 0.0 }
 0x101   : > { %v564_v27 = vadd.f32 %v2599_v42, %v563_v25  ;;  %v2033_v28 = vpop.f32.mrb[10].mxu0  ;;  %2106 = vmatprep.mubr.bf16.mxu1 %v869_v21  ;;  %v823_v57 = vmax.f32 %v679_v50, 0.0 }
 0x102   : > { %v575_v30 = vadd.f32 %v2033_v28, %v2599_v42  ;;  %v566_v31 = vpop.f32.mrb[11].mxu0  ;;  %2107 = vmatmul.mubr.bf16.gmra.mrb[36].mxu1 %v870_v17  ;;  %v796_v38 = vmax.f32 %v572_v24, 0.0  ;;  %v2648_v60 = vpack.c.bf16 %v825_v54, %v824_v45 }
 0x103   : > { %v567_v35 = vadd.f32 %v2599_v42, %v566_v31  ;;  %v794_v43 = vmax.f32 %v564_v27, 0.0  ;;  %v2651_v63 = vpack.c.bf16 %v823_v57, %v822_v49  ;;  %v2064_v0 = vpop.f32.mrb[8].mxu1 }
 0x104   : > { %v797_v39 = vmax.f32 %v575_v30, 0.0  ;;  %v700_v2 = vadd.f32 %v2064_v0, %v2599_v42  ;;  %v691_v3 = vpop.f32.mrb[9].mxu1 }
 0x105   : > { %v795_v44 = vmax.f32 %v567_v35, 0.0  ;;  %v692_v6 = vadd.f32 %v2599_v42, %v691_v3  ;;  %v2065_v7 = vpop.f32.mrb[10].mxu1 }
 0x106   : > { %v872_v48 = vpack.c.bf16 %v797_v39, %v796_v38  ;;  %v828_v10 = vmax.f32 %v700_v2, 0.0  ;;  %v703_v11 = vadd.f32 %v2065_v7, %v2599_v42  ;;  %v694_v12 = vpop.f32.mrb[11].mxu1 }
 0x107   : > { %v871_v52 = vpack.c.bf16 %v795_v44, %v794_v43  ;;  %v2036_v53 = vpop.f32.mrb[12].mxu0  ;;  %v826_v14 = vmax.f32 %v692_v6, 0.0  ;;  %v695_v15 = vadd.f32 %v2599_v42, %v694_v12 }
 0x108   : > { %v588_v55 = vadd.f32 %v2036_v53, %v2599_v42  ;;  %v579_v56 = vpop.f32.mrb[13].mxu0  ;;  %v829_v18 = vmax.f32 %v703_v11, 0.0 }
 0x109   : > { %v580_v58 = vadd.f32 %v2599_v42, %v579_v56  ;;  %v2037_v59 = vpop.f32.mrb[14].mxu0  ;;  %2110 = vmatprep.mubr.bf16.mxu1 %v871_v52  ;;  %v827_v21 = vmax.f32 %v695_v15, 0.0 }
 0x10a   : > { %v591_v61 = vadd.f32 %v2037_v59, %v2599_v42  ;;  %v582_v62 = vpop.f32.mrb[15].mxu0  ;;  %2111 = vmatmul.mubr.bf16.gmra.mrb[40].mxu1 %v872_v48  ;;  %v800_v4 = vmax.f32 %v588_v55, 0.0  ;;  %v2660_v24 = vpack.c.bf16 %v829_v18, %v828_v10 }
 0x10b   : > { %v583_v1 = vadd.f32 %v2599_v42, %v582_v62  ;;  %v798_v8 = vmax.f32 %v580_v58, 0.0  ;;  %v2663_v27 = vpack.c.bf16 %v827_v21, %v826_v14  ;;  %v2068_v28 = vpop.f32.mrb[12].mxu1 }
 0x10c   : > { %v801_v5 = vmax.f32 %v591_v61, 0.0  ;;  %v716_v31 = vadd.f32 %v2068_v28, %v2599_v42  ;;  %v707_v33 = vpop.f32.mrb[13].mxu1 }
 0x10d   : > { %v799_v9 = vmax.f32 %v583_v1, 0.0  ;;  %v708_v36 = vadd.f32 %v2599_v42, %v707_v33  ;;  %v2069_v37 = vpop.f32.mrb[14].mxu1 }
 0x10e   : > { %v874_v13 = vpack.c.bf16 %v801_v5, %v800_v4  ;;  %v832_v40 = vmax.f32 %v716_v31, 0.0  ;;  %v719_v41 = vadd.f32 %v2069_v37, %v2599_v42  ;;  %v710_v43 = vpop.f32.mrb[15].mxu1 }
 0x10f   : > { %v873_v16 = vpack.c.bf16 %v799_v9, %v798_v8  ;;  %v2040_v17 = vpop.f32.mrb[16].mxu0  ;;  %v830_v45 = vmax.f32 %v708_v36, 0.0  ;;  %v711_v46 = vadd.f32 %v2599_v42, %v710_v43 }
 0x110   : > { %v604_v19 = vadd.f32 %v2040_v17, %v2599_v42  ;;  %v595_v20 = vpop.f32.mrb[17].mxu0  ;;  %v833_v49 = vmax.f32 %v719_v41, 0.0 }
 0x111   : > { %v596_v22 = vadd.f32 %v2599_v42, %v595_v20  ;;  %v2041_v23 = vpop.f32.mrb[18].mxu0  ;;  %2114 = vmatprep.mubr.bf16.mxu1 %v873_v16  ;;  %v831_v52 = vmax.f32 %v711_v46, 0.0 }
 0x112   : > { %v607_v25 = vadd.f32 %v2041_v23, %v2599_v42  ;;  %v598_v26 = vpop.f32.mrb[19].mxu0  ;;  %2115 = vmatmul.mubr.bf16.gmra.mrb[44].mxu1 %v874_v13  ;;  %v804_v34 = vmax.f32 %v604_v19, 0.0  ;;  %v2672_v55 = vpack.c.bf16 %v833_v49, %v832_v40 }
 0x113   : > { %v599_v30 = vadd.f32 %v2599_v42, %v598_v26  ;;  %v802_v38 = vmax.f32 %v596_v22, 0.0  ;;  %v2675_v58 = vpack.c.bf16 %v831_v52, %v830_v45  ;;  %v2072_v59 = vpop.f32.mrb[16].mxu1 }
 0x114   : > { %v805_v35 = vmax.f32 %v607_v25, 0.0  ;;  %v732_v62 = vadd.f32 %v2072_v59, %v2599_v42  ;;  %v723_v0 = vpop.f32.mrb[17].mxu1 }
 0x115   : > { %v803_v39 = vmax.f32 %v599_v30, 0.0  ;;  %v724_v3 = vadd.f32 %v2599_v42, %v723_v0  ;;  %v2073_v4 = vpop.f32.mrb[18].mxu1 }
 0x116   : > { %v876_v44 = vpack.c.bf16 %v805_v35, %v804_v34  ;;  %v836_v7 = vmax.f32 %v732_v62, 0.0  ;;  %v735_v8 = vadd.f32 %v2073_v4, %v2599_v42  ;;  %v726_v9 = vpop.f32.mrb[19].mxu1 }
 0x117   : > { %v875_v47 = vpack.c.bf16 %v803_v39, %v802_v38  ;;  %v2044_v48 = vpop.f32.mrb[20].mxu0  ;;  %v834_v11 = vmax.f32 %v724_v3, 0.0  ;;  %v727_v12 = vadd.f32 %v2599_v42, %v726_v9 }
 0x118   : > { %v620_v50 = vadd.f32 %v2044_v48, %v2599_v42  ;;  %v611_v51 = vpop.f32.mrb[21].mxu0  ;;  %v837_v15 = vmax.f32 %v735_v8, 0.0 }
 0x119   : > { %v612_v53 = vadd.f32 %v2599_v42, %v611_v51  ;;  %v2045_v54 = vpop.f32.mrb[22].mxu0  ;;  %2118 = vmatprep.mubr.bf16.mxu1 %v875_v47  ;;  %v835_v18 = vmax.f32 %v727_v12, 0.0 }
 0x11a   : > { %v623_v56 = vadd.f32 %v2045_v54, %v2599_v42  ;;  %v614_v57 = vpop.f32.mrb[23].mxu0  ;;  %2119 = vmatmul.mubr.bf16.gmra.mrb[48].mxu1 %v876_v44  ;;  %v808_v1 = vmax.f32 %v620_v50, 0.0  ;;  %v2684_v21 = vpack.c.bf16 %v837_v15, %v836_v7 }
 0x11b   : > { %v615_v61 = vadd.f32 %v2599_v42, %v614_v57  ;;  %v806_v5 = vmax.f32 %v612_v53, 0.0  ;;  %v2687_v25 = vpack.c.bf16 %v835_v18, %v834_v11  ;;  %v2076_v26 = vpop.f32.mrb[20].mxu1 }
 0x11c   : > { %v809_v2 = vmax.f32 %v623_v56, 0.0  ;;  %v748_v30 = vadd.f32 %v2076_v26, %v2599_v42  ;;  %v739_v31 = vpop.f32.mrb[21].mxu1 }
 0x11d   : > { %v807_v6 = vmax.f32 %v615_v61, 0.0  ;;  %v740_v35 = vadd.f32 %v2599_v42, %v739_v31  ;;  %v2077_v36 = vpop.f32.mrb[22].mxu1 }
 0x11e   : > { %v878_v10 = vpack.c.bf16 %v809_v2, %v808_v1  ;;  %v840_v39 = vmax.f32 %v748_v30, 0.0  ;;  %v751_v40 = vadd.f32 %v2077_v36, %v2599_v42  ;;  %v742_v41 = vpop.f32.mrb[23].mxu1 }
 0x11f   : > { %v877_v13 = vpack.c.bf16 %v807_v6, %v806_v5  ;;  %v2048_v14 = vpop.f32.mrb[24].mxu0  ;;  %v838_v44 = vmax.f32 %v740_v35, 0.0  ;;  %v743_v45 = vadd.f32 %v2599_v42, %v742_v41 }
 0x120   : > { %v636_v16 = vadd.f32 %v2048_v14, %v2599_v42  ;;  %v627_v17 = vpop.f32.mrb[25].mxu0  ;;  %v841_v48 = vmax.f32 %v751_v40, 0.0 }
 0x121   : > { %v628_v19 = vadd.f32 %v2599_v42, %v627_v17  ;;  %v2049_v20 = vpop.f32.mrb[26].mxu0  ;;  %2122 = vmatprep.mubr.bf16.mxu1 %v877_v13  ;;  %v839_v51 = vmax.f32 %v743_v45, 0.0 }
 0x122   : > { %v639_v22 = vadd.f32 %v2049_v20, %v2599_v42  ;;  %v630_v23 = vpop.f32.mrb[27].mxu0  ;;  %2123 = vmatmul.mubr.bf16.gmra.mrb[52].mxu1 %v878_v10  ;;  %v812_v33 = vmax.f32 %v636_v16, 0.0  ;;  %v894_v54 = vpack.c.bf16 %v841_v48, %v840_v39 }
 0x123   : > { %v631_v28 = vadd.f32 %v2599_v42, %v630_v23  ;;  %v810_v37 = vmax.f32 %v628_v19, 0.0  ;;  %v893_v59 = vpack.c.bf16 %v839_v51, %v838_v44  ;;  %v2080_v61 = vpop.f32.mrb[24].mxu1 }
 0x124   : > { %v813_v34 = vmax.f32 %v639_v22, 0.0  ;;  %v764_v0 = vadd.f32 %v2080_v61, %v2599_v42  ;;  %v755_v1 = vpop.f32.mrb[25].mxu1 }
 0x125   : > { %v811_v38 = vmax.f32 %v631_v28, 0.0  ;;  %v756_v4 = vadd.f32 %v2599_v42, %v755_v1  ;;  %v2081_v5 = vpop.f32.mrb[26].mxu1 }
 0x126   : > { %v880_v43 = vpack.c.bf16 %v813_v34, %v812_v33  ;;  %v844_v8 = vmax.f32 %v764_v0, 0.0  ;;  %v767_v9 = vadd.f32 %v2081_v5, %v2599_v42  ;;  %v758_v10 = vpop.f32.mrb[27].mxu1 }
 0x127   : > { %v879_v46 = vpack.c.bf16 %v811_v38, %v810_v37  ;;  %v2052_v47 = vpop.f32.mrb[28].mxu0  ;;  %v842_v12 = vmax.f32 %v756_v4, 0.0  ;;  %v759_v13 = vadd.f32 %v2599_v42, %v758_v10 }
 0x128   : > { %v652_v49 = vadd.f32 %v2052_v47, %v2599_v42  ;;  %v643_v50 = vpop.f32.mrb[29].mxu0  ;;  %v845_v15 = vmax.f32 %v767_v9, 0.0 }
 0x129   : > { %v644_v52 = vadd.f32 %v2599_v42, %v643_v50  ;;  %v2053_v53 = vpop.f32.mrb[30].mxu0  ;;  %2126 = vmatprep.mubr.bf16.mxu1 %v879_v46  ;;  %v843_v16 = vmax.f32 %v759_v13, 0.0 }
 0x12a   : > { %v655_v56 = vadd.f32 %v2053_v53, %v2599_v42  ;;  %v646_v57 = vpop.f32.mrb[31].mxu0  ;;  %2127 = vmatmul.mubr.bf16.gmra.mrb[56].mxu1 %v880_v43  ;;  %v816_v2 = vmax.f32 %v652_v49, 0.0  ;;  %v896_v17 = vpack.c.bf16 %v845_v15, %v844_v8 }
 0x12b   : > { %v647_v62 = vadd.f32 %v2599_v42, %v646_v57  ;;  %v814_v6 = vmax.f32 %v644_v52, 0.0  ;;  %v895_v18 = vpack.c.bf16 %v843_v16, %v842_v12  ;;  %v2084_v19 = vpop.f32.mrb[28].mxu1 }
 0x12c   : > { %v817_v3 = vmax.f32 %v655_v56, 0.0  ;;  %v780_v20 = vadd.f32 %v2084_v19, %v2599_v42  ;;  %v771_v22 = vpop.f32.mrb[29].mxu1 }
 0x12d   : > { %v815_v7 = vmax.f32 %v647_v62, 0.0  ;;  %v772_v23 = vadd.f32 %v2599_v42, %v771_v22  ;;  %v2085_v26 = vpop.f32.mrb[30].mxu1 }
 0x12e   : > { %v882_v11 = vpack.c.bf16 %v817_v3, %v816_v2  ;;  %v848_v28 = vmax.f32 %v780_v20, 0.0  ;;  %v783_v30 = vadd.f32 %v2085_v26, %v2599_v42  ;;  %v774_v31 = vpop.f32.mrb[31].mxu1 }
 0x12f   : > { %v881_v14 = vpack.c.bf16 %v815_v7, %v814_v6  ;;  %v846_v33 = vmax.f32 %v772_v23, 0.0  ;;  %v775_v34 = vadd.f32 %v2599_v42, %v774_v31  ;;  %v2308_v42 = vld [vmem:[%s2983_s5 + $0x38] sm:$0xff]  }
 0x130   : > { %v849_v35 = vmax.f32 %v783_v30, 0.0  ;;  %2180 = vmatprep.subr.bf16.mxu0 %v2308_v42 }
 0x131   : > { %2130 = vmatprep.mubr.bf16.mxu1 %v881_v14  ;;  %v847_v36 = vmax.f32 %v775_v34, 0.0  ;;  %2181 = vmatpush3.bf16.msra.mxu0 %v2308_v42 }
 0x132   : > { %2131 = vmatmul.mubr.bf16.gmra.mrb[60].mxu1 %v882_v11  ;;  %v898_v37 = vpack.c.bf16 %v849_v35, %v848_v28 }
 0x133   : > { %2134 = vmatprep.mubr.bf16.mxu1 %v2633_v32  ;;  %v897_v38 = vpack.c.bf16 %v847_v36, %v846_v33 }
 0x13a   : > { %2135 = vmatmul.mubr.bf16.gmra.mrb[64].mxu1 %v2630_v29  ;;  %v2722_v29 = vld [vmem:[%s2982_s4] ss:$0 sm:$0xff] }
 0x13b   : > { %2138 = vmatprep.mubr.bf16.mxu1 %v2651_v63 }
 0x142   : > { %2139 = vmatmul.mubr.bf16.gmra.mrb[68].mxu1 %v2648_v60 }
 0x143   : > { %2142 = vmatprep.mubr.bf16.mxu1 %v2663_v27 }
 0x14a   : > { %2143 = vmatmul.mubr.bf16.gmra.mrb[72].mxu1 %v2660_v24 }
 0x14b   : > { %2146 = vmatprep.mubr.bf16.mxu1 %v2675_v58 }
 0x152   : > { %2147 = vmatmul.mubr.bf16.gmra.mrb[76].mxu1 %v2672_v55 }
 0x153   : > { %2150 = vmatprep.mubr.bf16.mxu1 %v2687_v25 }
 0x15a   : > { %2151 = vmatmul.mubr.bf16.gmra.mrb[80].mxu1 %v2684_v21 }
 0x15b   : > { %2154 = vmatprep.mubr.bf16.mxu1 %v893_v59 }
 0x162   : > { %2155 = vmatmul.mubr.bf16.gmra.mrb[84].mxu1 %v894_v54 }
 0x163   : > { %2158 = vmatprep.mubr.bf16.mxu1 %v895_v18 }
 0x16a   : > { %2159 = vmatmul.mubr.bf16.gmra.mrb[88].mxu1 %v896_v17 }
 0x16b   : > { %2162 = vmatprep.mubr.bf16.mxu1 %v897_v38 }
 0x172   : > { %2163 = vmatmul.mubr.bf16.gmra.mrb[92].mxu1 %v898_v37 }
 0x1cd   : > { %v2104_v32 = vpop.f32.mrb[32].mxu1 }
 0x1ce   : > { %v996_v60 = vadd.f32 %v2104_v32, %v2722_v29  ;;  %v987_v63 = vpop.f32.mrb[33].mxu1 }
 0x1cf   : > { %v988_v24 = vadd.f32 %v2722_v29, %v987_v63  ;;  %v2105_v27 = vpop.f32.mrb[34].mxu1 }
 0x1d0   : > { %v999_v55 = vadd.f32 %v2105_v27, %v2722_v29  ;;  %v990_v58 = vpop.f32.mrb[35].mxu1  ;;  %v1244_v25 = vmax.f32 %v996_v60, 0.0 }
 0x1d1   : > { %v991_v21 = vadd.f32 %v2722_v29, %v990_v58  ;;  %v1242_v40 = vmax.f32 %v988_v24, 0.0 }
 0x1d2   : > { %v1245_v39 = vmax.f32 %v999_v55, 0.0 }
 0x1d3   : > { %v1243_v41 = vmax.f32 %v991_v21, 0.0 }
 0x1d4   : > { %v1324_v43 = vpack.c.bf16 %v1245_v39, %v1244_v25 }
 0x1d5   : > { %v1323_v44 = vpack.c.bf16 %v1243_v41, %v1242_v40  ;;  %v2108_v45 = vpop.f32.mrb[36].mxu1 }
 0x1d6   : > { %v1012_v46 = vadd.f32 %v2108_v45, %v2722_v29  ;;  %v1003_v47 = vpop.f32.mrb[37].mxu1 }
 0x1d7   : > { %v1004_v48 = vadd.f32 %v2722_v29, %v1003_v47  ;;  %v2109_v49 = vpop.f32.mrb[38].mxu1  ;;  %2182 = vmatprep.mubr.bf16.mxu0 %v1323_v44 }
 0x1d8   : > { %v1015_v50 = vadd.f32 %v2109_v49, %v2722_v29  ;;  %v1006_v51 = vpop.f32.mrb[39].mxu1  ;;  %2183 = vmatmul.mubr.bf16.vlgmr.msra.gmra.mrb[32].mxu0 %v1324_v43  ;;  %v1248_v53 = vmax.f32 %v1012_v46, 0.0 }
 0x1d9   : > { %v1007_v52 = vadd.f32 %v2722_v29, %v1006_v51  ;;  %v1246_v56 = vmax.f32 %v1004_v48, 0.0 }
 0x1da   : > { %v1249_v54 = vmax.f32 %v1015_v50, 0.0 }
 0x1db   : > { %v1247_v57 = vmax.f32 %v1007_v52, 0.0 }
 0x1dc   : > { %v1326_v59 = vpack.c.bf16 %v1249_v54, %v1248_v53 }
 0x1dd   : > { %v1325_v61 = vpack.c.bf16 %v1247_v57, %v1246_v56  ;;  %v2112_v62 = vpop.f32.mrb[40].mxu1 }
 0x1de   : > { %v1028_v0 = vadd.f32 %v2112_v62, %v2722_v29  ;;  %v1019_v1 = vpop.f32.mrb[41].mxu1 }
 0x1df   : > { %v1020_v2 = vadd.f32 %v2722_v29, %v1019_v1  ;;  %v2113_v3 = vpop.f32.mrb[42].mxu1  ;;  %2186 = vmatprep.mubr.bf16.mxu0 %v1325_v61 }
 0x1e0   : > { %v1031_v4 = vadd.f32 %v2113_v3, %v2722_v29  ;;  %v1022_v5 = vpop.f32.mrb[43].mxu1  ;;  %2187 = vmatmul.mubr.bf16.gmra.mrb[36].mxu0 %v1326_v59  ;;  %v1252_v7 = vmax.f32 %v1028_v0, 0.0 }
 0x1e1   : > { %v1023_v6 = vadd.f32 %v2722_v29, %v1022_v5  ;;  %v1250_v9 = vmax.f32 %v1020_v2, 0.0 }
 0x1e2   : > { %v1253_v8 = vmax.f32 %v1031_v4, 0.0 }
 0x1e3   : > { %v1251_v10 = vmax.f32 %v1023_v6, 0.0 }
 0x1e4   : > { %v1328_v11 = vpack.c.bf16 %v1253_v8, %v1252_v7 }
 0x1e5   : > { %v1327_v12 = vpack.c.bf16 %v1251_v10, %v1250_v9  ;;  %v2116_v13 = vpop.f32.mrb[44].mxu1 }
 0x1e6   : > { %v1044_v14 = vadd.f32 %v2116_v13, %v2722_v29  ;;  %v1035_v15 = vpop.f32.mrb[45].mxu1 }
 0x1e7   : > { %v1036_v16 = vadd.f32 %v2722_v29, %v1035_v15  ;;  %v2117_v17 = vpop.f32.mrb[46].mxu1  ;;  %2190 = vmatprep.mubr.bf16.mxu0 %v1327_v12 }
 0x1e8   : > { %v1047_v18 = vadd.f32 %v2117_v17, %v2722_v29  ;;  %v1038_v19 = vpop.f32.mrb[47].mxu1  ;;  %2191 = vmatmul.mubr.bf16.gmra.mrb[40].mxu0 %v1328_v11  ;;  %v1256_v22 = vmax.f32 %v1044_v14, 0.0 }
 0x1e9   : > { %v1039_v20 = vadd.f32 %v2722_v29, %v1038_v19  ;;  %v1254_v26 = vmax.f32 %v1036_v16, 0.0 }
 0x1ea   : > { %v1257_v23 = vmax.f32 %v1047_v18, 0.0 }
 0x1eb   : > { %v1255_v28 = vmax.f32 %v1039_v20, 0.0 }
 0x1ec   : > { %v1330_v30 = vpack.c.bf16 %v1257_v23, %v1256_v22 }
 0x1ed   : > { %v1329_v31 = vpack.c.bf16 %v1255_v28, %v1254_v26  ;;  %v2120_v33 = vpop.f32.mrb[48].mxu1 }
 0x1ee   : > { %v1060_v34 = vadd.f32 %v2120_v33, %v2722_v29  ;;  %v1051_v35 = vpop.f32.mrb[49].mxu1 }
 0x1ef   : > { %v1052_v36 = vadd.f32 %v2722_v29, %v1051_v35  ;;  %v2121_v37 = vpop.f32.mrb[50].mxu1  ;;  %2194 = vmatprep.mubr.bf16.mxu0 %v1329_v31 }
 0x1f0   : > { %v1063_v38 = vadd.f32 %v2121_v37, %v2722_v29  ;;  %v1054_v42 = vpop.f32.mrb[51].mxu1  ;;  %2195 = vmatmul.mubr.bf16.gmra.mrb[44].mxu0 %v1330_v30  ;;  %v1260_v60 = vmax.f32 %v1060_v34, 0.0 }
 0x1f1   : > { %v1055_v32 = vadd.f32 %v2722_v29, %v1054_v42  ;;  %v1258_v24 = vmax.f32 %v1052_v36, 0.0 }
 0x1f2   : > { %v1261_v63 = vmax.f32 %v1063_v38, 0.0 }
 0x1f3   : > { %v1259_v27 = vmax.f32 %v1055_v32, 0.0 }
 0x1f4   : > { %v1332_v55 = vpack.c.bf16 %v1261_v63, %v1260_v60 }
 0x1f5   : > { %v1331_v58 = vpack.c.bf16 %v1259_v27, %v1258_v24  ;;  %v2124_v21 = vpop.f32.mrb[52].mxu1 }
 0x1f6   : > { %v1076_v25 = vadd.f32 %v2124_v21, %v2722_v29  ;;  %v1067_v39 = vpop.f32.mrb[53].mxu1 }
 0x1f7   : > { %v1068_v40 = vadd.f32 %v2722_v29, %v1067_v39  ;;  %v2125_v41 = vpop.f32.mrb[54].mxu1  ;;  %2198 = vmatprep.mubr.bf16.mxu0 %v1331_v58 }
 0x1f8   : > { %v1079_v43 = vadd.f32 %v2125_v41, %v2722_v29  ;;  %v1070_v44 = vpop.f32.mrb[55].mxu1  ;;  %2199 = vmatmul.mubr.bf16.gmra.mrb[48].mxu0 %v1332_v55  ;;  %v1264_v46 = vmax.f32 %v1076_v25, 0.0 }
 0x1f9   : > { %v1071_v45 = vadd.f32 %v2722_v29, %v1070_v44  ;;  %v1262_v48 = vmax.f32 %v1068_v40, 0.0 }
 0x1fa   : > { %v1265_v47 = vmax.f32 %v1079_v43, 0.0 }
 0x1fb   : > { %v1263_v49 = vmax.f32 %v1071_v45, 0.0 }
 0x1fc   : > { %v1334_v50 = vpack.c.bf16 %v1265_v47, %v1264_v46 }
 0x1fd   : > { %v1333_v51 = vpack.c.bf16 %v1263_v49, %v1262_v48  ;;  %v2128_v52 = vpop.f32.mrb[56].mxu1 }
 0x1fe   : > { %v1092_v53 = vadd.f32 %v2128_v52, %v2722_v29  ;;  %v1083_v54 = vpop.f32.mrb[57].mxu1 }
 0x1ff   : > { %v1084_v56 = vadd.f32 %v2722_v29, %v1083_v54  ;;  %v2129_v57 = vpop.f32.mrb[58].mxu1  ;;  %2202 = vmatprep.mubr.bf16.mxu0 %v1333_v51 }
 0x200   : > { %v1095_v59 = vadd.f32 %v2129_v57, %v2722_v29  ;;  %v1086_v61 = vpop.f32.mrb[59].mxu1  ;;  %2203 = vmatmul.mubr.bf16.gmra.mrb[52].mxu0 %v1334_v50  ;;  %v1268_v0 = vmax.f32 %v1092_v53, 0.0 }
 0x201   : > { %v1087_v62 = vadd.f32 %v2722_v29, %v1086_v61  ;;  %v1266_v2 = vmax.f32 %v1084_v56, 0.0 }
 0x202   : > { %v1269_v1 = vmax.f32 %v1095_v59, 0.0 }
 0x203   : > { %v1267_v3 = vmax.f32 %v1087_v62, 0.0 }
 0x204   : > { %v1336_v4 = vpack.c.bf16 %v1269_v1, %v1268_v0 }
 0x205   : > { %v1335_v5 = vpack.c.bf16 %v1267_v3, %v1266_v2  ;;  %v2132_v6 = vpop.f32.mrb[60].mxu1 }
 0x206   : > { %v1108_v7 = vadd.f32 %v2132_v6, %v2722_v29  ;;  %v1099_v8 = vpop.f32.mrb[61].mxu1 }
 0x207   : > { %v1100_v9 = vadd.f32 %v2722_v29, %v1099_v8  ;;  %v2133_v10 = vpop.f32.mrb[62].mxu1  ;;  %2206 = vmatprep.mubr.bf16.mxu0 %v1335_v5 }
 0x208   : > { %v1111_v11 = vadd.f32 %v2133_v10, %v2722_v29  ;;  %v1102_v12 = vpop.f32.mrb[63].mxu1  ;;  %2207 = vmatmul.mubr.bf16.gmra.mrb[56].mxu0 %v1336_v4  ;;  %v1272_v14 = vmax.f32 %v1108_v7, 0.0 }
 0x209   : > { %v1103_v13 = vadd.f32 %v2722_v29, %v1102_v12  ;;  %v1270_v16 = vmax.f32 %v1100_v9, 0.0 }
 0x20a   : > { %v1273_v15 = vmax.f32 %v1111_v11, 0.0 }
 0x20b   : > { %v1271_v17 = vmax.f32 %v1103_v13, 0.0 }
 0x20c   : > { %v1338_v18 = vpack.c.bf16 %v1273_v15, %v1272_v14 }
 0x20d   : > { %v1337_v19 = vpack.c.bf16 %v1271_v17, %v1270_v16  ;;  %v2136_v20 = vpop.f32.mrb[64].mxu1 }
 0x20e   : > { %v1124_v22 = vadd.f32 %v2136_v20, %v2722_v29  ;;  %v1115_v23 = vpop.f32.mrb[65].mxu1 }
 0x20f   : > { %v1116_v26 = vadd.f32 %v2722_v29, %v1115_v23  ;;  %v2137_v28 = vpop.f32.mrb[66].mxu1  ;;  %2210 = vmatprep.mubr.bf16.mxu0 %v1337_v19 }
 0x210   : > { %v1127_v30 = vadd.f32 %v2137_v28, %v2722_v29  ;;  %v1118_v31 = vpop.f32.mrb[67].mxu1  ;;  %2211 = vmatmul.mubr.bf16.gmra.mrb[60].mxu0 %v1338_v18  ;;  %v1276_v34 = vmax.f32 %v1124_v22, 0.0 }
 0x211   : > { %v1119_v33 = vadd.f32 %v2722_v29, %v1118_v31  ;;  %v1274_v36 = vmax.f32 %v1116_v26, 0.0 }
 0x212   : > { %v1277_v35 = vmax.f32 %v1127_v30, 0.0 }
 0x213   : > { %v1275_v37 = vmax.f32 %v1119_v33, 0.0 }
 0x214   : > { %v1340_v38 = vpack.c.bf16 %v1277_v35, %v1276_v34 }
 0x215   : > { %v1339_v42 = vpack.c.bf16 %v1275_v37, %v1274_v36  ;;  %v2140_v32 = vpop.f32.mrb[68].mxu1 }
 0x216   : > { %v1140_v60 = vadd.f32 %v2140_v32, %v2722_v29  ;;  %v1131_v63 = vpop.f32.mrb[69].mxu1 }
 0x217   : > { %v1132_v24 = vadd.f32 %v2722_v29, %v1131_v63  ;;  %v2141_v27 = vpop.f32.mrb[70].mxu1  ;;  %2214 = vmatprep.mubr.bf16.mxu0 %v1339_v42 }
 0x218   : > { %v1143_v55 = vadd.f32 %v2141_v27, %v2722_v29  ;;  %v1134_v58 = vpop.f32.mrb[71].mxu1  ;;  %2215 = vmatmul.mubr.bf16.gmra.mrb[64].mxu0 %v1340_v38  ;;  %v1280_v25 = vmax.f32 %v1140_v60, 0.0 }
 0x219   : > { %v1135_v21 = vadd.f32 %v2722_v29, %v1134_v58  ;;  %v1278_v40 = vmax.f32 %v1132_v24, 0.0 }
 0x21a   : > { %v1281_v39 = vmax.f32 %v1143_v55, 0.0 }
 0x21b   : > { %v1279_v41 = vmax.f32 %v1135_v21, 0.0 }
 0x21c   : > { %v1342_v43 = vpack.c.bf16 %v1281_v39, %v1280_v25 }
 0x21d   : > { %v1341_v44 = vpack.c.bf16 %v1279_v41, %v1278_v40  ;;  %v2144_v45 = vpop.f32.mrb[72].mxu1 }
 0x21e   : > { %v1156_v46 = vadd.f32 %v2144_v45, %v2722_v29  ;;  %v1147_v47 = vpop.f32.mrb[73].mxu1 }
 0x21f   : > { %v1148_v48 = vadd.f32 %v2722_v29, %v1147_v47  ;;  %v2145_v49 = vpop.f32.mrb[74].mxu1  ;;  %2218 = vmatprep.mubr.bf16.mxu0 %v1341_v44 }
 0x220   : > { %v1159_v50 = vadd.f32 %v2145_v49, %v2722_v29  ;;  %v1150_v51 = vpop.f32.mrb[75].mxu1  ;;  %2219 = vmatmul.mubr.bf16.gmra.mrb[68].mxu0 %v1342_v43  ;;  %v1284_v53 = vmax.f32 %v1156_v46, 0.0 }
 0x221   : > { %v1151_v52 = vadd.f32 %v2722_v29, %v1150_v51  ;;  %v1282_v56 = vmax.f32 %v1148_v48, 0.0 }
 0x222   : > { %v1285_v54 = vmax.f32 %v1159_v50, 0.0 }
 0x223   : > { %v1283_v57 = vmax.f32 %v1151_v52, 0.0 }
 0x224   : > { %v1344_v59 = vpack.c.bf16 %v1285_v54, %v1284_v53 }
 0x225   : > { %v1343_v61 = vpack.c.bf16 %v1283_v57, %v1282_v56  ;;  %v2148_v62 = vpop.f32.mrb[76].mxu1 }
 0x226   : > { %v1172_v0 = vadd.f32 %v2148_v62, %v2722_v29  ;;  %v1163_v1 = vpop.f32.mrb[77].mxu1 }
 0x227   : > { %v1164_v2 = vadd.f32 %v2722_v29, %v1163_v1  ;;  %v2149_v3 = vpop.f32.mrb[78].mxu1  ;;  %2222 = vmatprep.mubr.bf16.mxu0 %v1343_v61 }
 0x228   : > { %v1175_v4 = vadd.f32 %v2149_v3, %v2722_v29  ;;  %v1166_v5 = vpop.f32.mrb[79].mxu1  ;;  %2223 = vmatmul.mubr.bf16.gmra.mrb[72].mxu0 %v1344_v59  ;;  %v1288_v7 = vmax.f32 %v1172_v0, 0.0 }
 0x229   : > { %v1167_v6 = vadd.f32 %v2722_v29, %v1166_v5  ;;  %v1286_v9 = vmax.f32 %v1164_v2, 0.0 }
 0x22a   : > { %v1289_v8 = vmax.f32 %v1175_v4, 0.0 }
 0x22b   : > { %v1287_v10 = vmax.f32 %v1167_v6, 0.0  ;;  %v2794_v6 = vld [vmem:[%s2984_s6] ss:$0 sm:$0xff] }
 0x22c   : > { %v1346_v11 = vpack.c.bf16 %v1289_v8, %v1288_v7 }
 0x22d   : > { %v1345_v12 = vpack.c.bf16 %v1287_v10, %v1286_v9  ;;  %v2152_v13 = vpop.f32.mrb[80].mxu1 }
 0x22e   : > { %v1188_v14 = vadd.f32 %v2152_v13, %v2722_v29  ;;  %v1179_v15 = vpop.f32.mrb[81].mxu1 }
 0x22f   : > { %v1180_v16 = vadd.f32 %v2722_v29, %v1179_v15  ;;  %v2153_v17 = vpop.f32.mrb[82].mxu1  ;;  %2226 = vmatprep.mubr.bf16.mxu0 %v1345_v12 }
 0x230   : > { %v1191_v18 = vadd.f32 %v2153_v17, %v2722_v29  ;;  %v1182_v19 = vpop.f32.mrb[83].mxu1  ;;  %2227 = vmatmul.mubr.bf16.gmra.mrb[76].mxu0 %v1346_v11  ;;  %v1292_v22 = vmax.f32 %v1188_v14, 0.0 }
 0x231   : > { %v1183_v20 = vadd.f32 %v2722_v29, %v1182_v19  ;;  %v1290_v26 = vmax.f32 %v1180_v16, 0.0 }
 0x232   : > { %v1293_v23 = vmax.f32 %v1191_v18, 0.0 }
 0x233   : > { %v1291_v28 = vmax.f32 %v1183_v20, 0.0 }
 0x234   : > { %v1348_v30 = vpack.c.bf16 %v1293_v23, %v1292_v22 }
 0x235   : > { %v1347_v31 = vpack.c.bf16 %v1291_v28, %v1290_v26  ;;  %v2156_v33 = vpop.f32.mrb[84].mxu1 }
 0x236   : > { %v1204_v34 = vadd.f32 %v2156_v33, %v2722_v29  ;;  %v1195_v35 = vpop.f32.mrb[85].mxu1 }
 0x237   : > { %v1196_v36 = vadd.f32 %v2722_v29, %v1195_v35  ;;  %v2157_v37 = vpop.f32.mrb[86].mxu1  ;;  %2230 = vmatprep.mubr.bf16.mxu0 %v1347_v31 }
 0x238   : > { %v1207_v38 = vadd.f32 %v2157_v37, %v2722_v29  ;;  %v1198_v42 = vpop.f32.mrb[87].mxu1  ;;  %2231 = vmatmul.mubr.bf16.gmra.mrb[80].mxu0 %v1348_v30  ;;  %v1296_v60 = vmax.f32 %v1204_v34, 0.0 }
 0x239   : > { %v1199_v32 = vadd.f32 %v2722_v29, %v1198_v42  ;;  %v1294_v24 = vmax.f32 %v1196_v36, 0.0 }
 0x23a   : > { %v1297_v63 = vmax.f32 %v1207_v38, 0.0 }
 0x23b   : > { %v1295_v27 = vmax.f32 %v1199_v32, 0.0 }
 0x23c   : > { %v1350_v55 = vpack.c.bf16 %v1297_v63, %v1296_v60 }
 0x23d   : > { %v1349_v58 = vpack.c.bf16 %v1295_v27, %v1294_v24  ;;  %v2160_v21 = vpop.f32.mrb[88].mxu1 }
 0x23e   : > { %v1220_v25 = vadd.f32 %v2160_v21, %v2722_v29  ;;  %v1211_v39 = vpop.f32.mrb[89].mxu1 }
 0x23f   : > { %v1212_v40 = vadd.f32 %v2722_v29, %v1211_v39  ;;  %v2161_v41 = vpop.f32.mrb[90].mxu1  ;;  %2234 = vmatprep.mubr.bf16.mxu0 %v1349_v58 }
 0x240   : > { %v1223_v43 = vadd.f32 %v2161_v41, %v2722_v29  ;;  %v1214_v44 = vpop.f32.mrb[91].mxu1  ;;  %2235 = vmatmul.mubr.bf16.gmra.mrb[84].mxu0 %v1350_v55  ;;  %v1300_v46 = vmax.f32 %v1220_v25, 0.0 }
 0x241   : > { %v1215_v45 = vadd.f32 %v2722_v29, %v1214_v44  ;;  %v1298_v48 = vmax.f32 %v1212_v40, 0.0 }
 0x242   : > { %v1301_v47 = vmax.f32 %v1223_v43, 0.0 }
 0x243   : > { %v1299_v49 = vmax.f32 %v1215_v45, 0.0 }
 0x244   : > { %v1352_v50 = vpack.c.bf16 %v1301_v47, %v1300_v46 }
 0x245   : > { %v1351_v51 = vpack.c.bf16 %v1299_v49, %v1298_v48  ;;  %v2164_v52 = vpop.f32.mrb[92].mxu1 }
 0x246   : > { %v1236_v53 = vadd.f32 %v2164_v52, %v2722_v29  ;;  %v1227_v54 = vpop.f32.mrb[93].mxu1 }
 0x247   : > { %v1228_v56 = vadd.f32 %v2722_v29, %v1227_v54  ;;  %v2165_v57 = vpop.f32.mrb[94].mxu1  ;;  %2238 = vmatprep.mubr.bf16.mxu0 %v1351_v51 }
 0x248   : > { %v1239_v59 = vadd.f32 %v2165_v57, %v2722_v29  ;;  %v1230_v61 = vpop.f32.mrb[95].mxu1  ;;  %2239 = vmatmul.mubr.bf16.gmra.mrb[88].mxu0 %v1352_v50  ;;  %v1304_v0 = vmax.f32 %v1236_v53, 0.0 }
 0x249   : > { %v1231_v62 = vadd.f32 %v2722_v29, %v1230_v61  ;;  %v1302_v2 = vmax.f32 %v1228_v56, 0.0 }
 0x24a   : > { %v1305_v1 = vmax.f32 %v1239_v59, 0.0 }
 0x24b   : > { %v1303_v3 = vmax.f32 %v1231_v62, 0.0 }
 0x24c   : > { %v1354_v4 = vpack.c.bf16 %v1305_v1, %v1304_v0 }
 0x24d   : > { %v1353_v5 = vpack.c.bf16 %v1303_v3, %v1302_v2 }
 0x24f   : > { %2242 = vmatprep.mubr.bf16.mxu0 %v1353_v5 }
 0x250   : > { %2243 = vmatmul.mubr.bf16.gmra.mrb[92].mxu0 %v1354_v4 }
 0x2ab   : > { %v2184_v7 = vpop.f32.mrb[32].mxu0 }
 0x2ac   : > { %v1452_v8 = vadd.f32 %v2184_v7, %v2794_v6  ;;  %v1443_v29 = vpop.f32.mrb[33].mxu0 }
 0x2ad   : > { %v1444_v9 = vadd.f32 %v2794_v6, %v1443_v29  ;;  %v2185_v10 = vpop.f32.mrb[34].mxu0 }
 0x2ae   : > { %1700 = vst [vmem:[%s2798_s20 + $0x10] sm:$0xff] %v1452_v8  ;;  %v1455_v11 = vadd.f32 %v2185_v10, %v2794_v6  ;;  %v1446_v12 = vpop.f32.mrb[35].mxu0 }
 0x2af   : > { %1698 = vst [vmem:[%s2798_s20] sm:$0xff] %v1444_v9  ;;  %v1447_v13 = vadd.f32 %v2794_v6, %v1446_v12 }
 0x2b0   : > { %1701 = vst [vmem:[%s2798_s20 + $0x18] sm:$0xff] %v1455_v11 }
 0x2b1   : > { %1699 = vst [vmem:[%s2798_s20 + $0x8] sm:$0xff] %v1447_v13 }
 0x2b3   : > { %v2188_v14 = vpop.f32.mrb[36].mxu0 }
 0x2b4   : > { %v1468_v15 = vadd.f32 %v2188_v14, %v2794_v6  ;;  %v1459_v16 = vpop.f32.mrb[37].mxu0 }
 0x2b5   : > { %v1460_v17 = vadd.f32 %v2794_v6, %v1459_v16  ;;  %v2189_v18 = vpop.f32.mrb[38].mxu0 }
 0x2b6   : > { %1704 = vst [vmem:[%s2798_s20 + $0x30] sm:$0xff] %v1468_v15  ;;  %v1471_v19 = vadd.f32 %v2189_v18, %v2794_v6  ;;  %v1462_v20 = vpop.f32.mrb[39].mxu0 }
 0x2b7   : > { %1702 = vst [vmem:[%s2798_s20 + $0x20] sm:$0xff] %v1460_v17  ;;  %v1463_v22 = vadd.f32 %v2794_v6, %v1462_v20 }
 0x2b8   : > { %1705 = vst [vmem:[%s2798_s20 + $0x38] sm:$0xff] %v1471_v19 }
 0x2b9   : > { %1703 = vst [vmem:[%s2798_s20 + $0x28] sm:$0xff] %v1463_v22 }
 0x2bb   : > { %v2192_v23 = vpop.f32.mrb[40].mxu0 }
 0x2bc   : > { %v1484_v26 = vadd.f32 %v2192_v23, %v2794_v6  ;;  %v1475_v28 = vpop.f32.mrb[41].mxu0 }
 0x2bd   : > { %v1476_v30 = vadd.f32 %v2794_v6, %v1475_v28  ;;  %v2193_v31 = vpop.f32.mrb[42].mxu0 }
 0x2be   : > { %1708 = vst [vmem:[%s2798_s20 + $0x50] sm:$0xff] %v1484_v26  ;;  %v1487_v33 = vadd.f32 %v2193_v31, %v2794_v6  ;;  %v1478_v34 = vpop.f32.mrb[43].mxu0 }
 0x2bf   : > { %1706 = vst [vmem:[%s2798_s20 + $0x40] sm:$0xff] %v1476_v30  ;;  %v1479_v35 = vadd.f32 %v2794_v6, %v1478_v34 }
 0x2c0   : > { %1709 = vst [vmem:[%s2798_s20 + $0x58] sm:$0xff] %v1487_v33 }
 0x2c1   : > { %1707 = vst [vmem:[%s2798_s20 + $0x48] sm:$0xff] %v1479_v35 }
 0x2c3   : > { %v2196_v36 = vpop.f32.mrb[44].mxu0 }
 0x2c4   : > { %v1500_v37 = vadd.f32 %v2196_v36, %v2794_v6  ;;  %v1491_v38 = vpop.f32.mrb[45].mxu0 }
 0x2c5   : > { %v1492_v42 = vadd.f32 %v2794_v6, %v1491_v38  ;;  %v2197_v32 = vpop.f32.mrb[46].mxu0 }
 0x2c6   : > { %1712 = vst [vmem:[%s2798_s20 + $0x70] sm:$0xff] %v1500_v37  ;;  %v1503_v60 = vadd.f32 %v2197_v32, %v2794_v6  ;;  %v1494_v63 = vpop.f32.mrb[47].mxu0 }
 0x2c7   : > { %1710 = vst [vmem:[%s2798_s20 + $0x60] sm:$0xff] %v1492_v42  ;;  %v1495_v24 = vadd.f32 %v2794_v6, %v1494_v63 }
 0x2c8   : > { %1713 = vst [vmem:[%s2798_s20 + $0x78] sm:$0xff] %v1503_v60 }
 0x2c9   : > { %1711 = vst [vmem:[%s2798_s20 + $0x68] sm:$0xff] %v1495_v24 }
 0x2cb   : > { %v2200_v27 = vpop.f32.mrb[48].mxu0 }
 0x2cc   : > { %v1516_v55 = vadd.f32 %v2200_v27, %v2794_v6  ;;  %v1507_v58 = vpop.f32.mrb[49].mxu0 }
 0x2cd   : > { %v1508_v21 = vadd.f32 %v2794_v6, %v1507_v58  ;;  %v2201_v25 = vpop.f32.mrb[50].mxu0 }
 0x2ce   : > { %1716 = vst [vmem:[%s2798_s20 + $0x90] sm:$0xff] %v1516_v55  ;;  %v1519_v39 = vadd.f32 %v2201_v25, %v2794_v6  ;;  %v1510_v40 = vpop.f32.mrb[51].mxu0 }
 0x2cf   : > { %1714 = vst [vmem:[%s2798_s20 + $0x80] sm:$0xff] %v1508_v21  ;;  %v1511_v41 = vadd.f32 %v2794_v6, %v1510_v40 }
 0x2d0   : > { %1717 = vst [vmem:[%s2798_s20 + $0x98] sm:$0xff] %v1519_v39 }
 0x2d1   : > { %1715 = vst [vmem:[%s2798_s20 + $0x88] sm:$0xff] %v1511_v41 }
 0x2d3   : > { %v2204_v43 = vpop.f32.mrb[52].mxu0 }
 0x2d4   : > { %v1532_v44 = vadd.f32 %v2204_v43, %v2794_v6  ;;  %v1523_v45 = vpop.f32.mrb[53].mxu0 }
 0x2d5   : > { %v1524_v46 = vadd.f32 %v2794_v6, %v1523_v45  ;;  %v2205_v47 = vpop.f32.mrb[54].mxu0 }
 0x2d6   : > { %1720 = vst [vmem:[%s2798_s20 + $0xb0] sm:$0xff] %v1532_v44  ;;  %v1535_v48 = vadd.f32 %v2205_v47, %v2794_v6  ;;  %v1526_v49 = vpop.f32.mrb[55].mxu0 }
 0x2d7   : > { %1718 = vst [vmem:[%s2798_s20 + $0xa0] sm:$0xff] %v1524_v46  ;;  %v1527_v50 = vadd.f32 %v2794_v6, %v1526_v49 }
 0x2d8   : > { %1721 = vst [vmem:[%s2798_s20 + $0xb8] sm:$0xff] %v1535_v48 }
 0x2d9   : > { %1719 = vst [vmem:[%s2798_s20 + $0xa8] sm:$0xff] %v1527_v50 }
 0x2db   : > { %v2208_v51 = vpop.f32.mrb[56].mxu0 }
 0x2dc   : > { %v1548_v52 = vadd.f32 %v2208_v51, %v2794_v6  ;;  %v1539_v53 = vpop.f32.mrb[57].mxu0 }
 0x2dd   : > { %v1540_v54 = vadd.f32 %v2794_v6, %v1539_v53  ;;  %v2209_v56 = vpop.f32.mrb[58].mxu0 }
 0x2de   : > { %1724 = vst [vmem:[%s2798_s20 + $0xd0] sm:$0xff] %v1548_v52  ;;  %v1551_v57 = vadd.f32 %v2209_v56, %v2794_v6  ;;  %v1542_v59 = vpop.f32.mrb[59].mxu0 }
 0x2df   : > { %1722 = vst [vmem:[%s2798_s20 + $0xc0] sm:$0xff] %v1540_v54  ;;  %v1543_v61 = vadd.f32 %v2794_v6, %v1542_v59 }
 0x2e0   : > { %1725 = vst [vmem:[%s2798_s20 + $0xd8] sm:$0xff] %v1551_v57 }
 0x2e1   : > { %1723 = vst [vmem:[%s2798_s20 + $0xc8] sm:$0xff] %v1543_v61 }
 0x2e3   : > { %v2212_v62 = vpop.f32.mrb[60].mxu0 }
 0x2e4   : > { %v1564_v0 = vadd.f32 %v2212_v62, %v2794_v6  ;;  %v1555_v1 = vpop.f32.mrb[61].mxu0 }
 0x2e5   : > { %v1556_v2 = vadd.f32 %v2794_v6, %v1555_v1  ;;  %v2213_v3 = vpop.f32.mrb[62].mxu0 }
 0x2e6   : > { %1728 = vst [vmem:[%s2798_s20 + $0xf0] sm:$0xff] %v1564_v0  ;;  %v1567_v4 = vadd.f32 %v2213_v3, %v2794_v6  ;;  %v1558_v5 = vpop.f32.mrb[63].mxu0 }
 0x2e7   : > { %1726 = vst [vmem:[%s2798_s20 + $0xe0] sm:$0xff] %v1556_v2  ;;  %v1559_v7 = vadd.f32 %v2794_v6, %v1558_v5 }
 0x2e8   : > { %1729 = vst [vmem:[%s2798_s20 + $0xf8] sm:$0xff] %v1567_v4 }
 0x2e9   : > { %1727 = vst [vmem:[%s2798_s20 + $0xe8] sm:$0xff] %v1559_v7 }
 0x2eb   : > { %v2216_v8 = vpop.f32.mrb[64].mxu0 }
 0x2ec   : > { %v1580_v29 = vadd.f32 %v2216_v8, %v2794_v6  ;;  %v1571_v9 = vpop.f32.mrb[65].mxu0 }
 0x2ed   : > { %v1572_v10 = vadd.f32 %v2794_v6, %v1571_v9  ;;  %v2217_v11 = vpop.f32.mrb[66].mxu0 }
 0x2ee   : > { %1732 = vst [vmem:[%s2798_s20 + $0x110] sm:$0xff] %v1580_v29  ;;  %v1583_v12 = vadd.f32 %v2217_v11, %v2794_v6  ;;  %v1574_v13 = vpop.f32.mrb[67].mxu0 }
 0x2ef   : > { %1730 = vst [vmem:[%s2798_s20 + $0x100] sm:$0xff] %v1572_v10  ;;  %v1575_v14 = vadd.f32 %v2794_v6, %v1574_v13 }
 0x2f0   : > { %1733 = vst [vmem:[%s2798_s20 + $0x118] sm:$0xff] %v1583_v12 }
 0x2f1   : > { %1731 = vst [vmem:[%s2798_s20 + $0x108] sm:$0xff] %v1575_v14 }
 0x2f3   : > { %v2220_v15 = vpop.f32.mrb[68].mxu0 }
 0x2f4   : > { %v1596_v16 = vadd.f32 %v2220_v15, %v2794_v6  ;;  %v1587_v17 = vpop.f32.mrb[69].mxu0 }
 0x2f5   : > { %v1588_v18 = vadd.f32 %v2794_v6, %v1587_v17  ;;  %v2221_v19 = vpop.f32.mrb[70].mxu0 }
 0x2f6   : > { %1736 = vst [vmem:[%s2798_s20 + $0x130] sm:$0xff] %v1596_v16  ;;  %v1599_v20 = vadd.f32 %v2221_v19, %v2794_v6  ;;  %v1590_v22 = vpop.f32.mrb[71].mxu0 }
 0x2f7   : > { %1734 = vst [vmem:[%s2798_s20 + $0x120] sm:$0xff] %v1588_v18  ;;  %v1591_v23 = vadd.f32 %v2794_v6, %v1590_v22 }
 0x2f8   : > { %1737 = vst [vmem:[%s2798_s20 + $0x138] sm:$0xff] %v1599_v20 }
 0x2f9   : > { %1735 = vst [vmem:[%s2798_s20 + $0x128] sm:$0xff] %v1591_v23 }
 0x2fb   : > { %v2224_v26 = vpop.f32.mrb[72].mxu0 }
 0x2fc   : > { %v1612_v28 = vadd.f32 %v2224_v26, %v2794_v6  ;;  %v1603_v30 = vpop.f32.mrb[73].mxu0 }
 0x2fd   : > { %v1604_v31 = vadd.f32 %v2794_v6, %v1603_v30  ;;  %v2225_v33 = vpop.f32.mrb[74].mxu0 }
 0x2fe   : > { %1740 = vst [vmem:[%s2798_s20 + $0x150] sm:$0xff] %v1612_v28  ;;  %v1615_v34 = vadd.f32 %v2225_v33, %v2794_v6  ;;  %v1606_v35 = vpop.f32.mrb[75].mxu0 }
 0x2ff   : > { %1738 = vst [vmem:[%s2798_s20 + $0x140] sm:$0xff] %v1604_v31  ;;  %v1607_v36 = vadd.f32 %v2794_v6, %v1606_v35 }
 0x300   : > { %1741 = vst [vmem:[%s2798_s20 + $0x158] sm:$0xff] %v1615_v34 }
 0x301   : > { %1739 = vst [vmem:[%s2798_s20 + $0x148] sm:$0xff] %v1607_v36 }
 0x303   : > { %v2228_v37 = vpop.f32.mrb[76].mxu0 }
 0x304   : > { %v1628_v38 = vadd.f32 %v2228_v37, %v2794_v6  ;;  %v1619_v42 = vpop.f32.mrb[77].mxu0 }
 0x305   : > { %v1620_v32 = vadd.f32 %v2794_v6, %v1619_v42  ;;  %v2229_v60 = vpop.f32.mrb[78].mxu0 }
 0x306   : > { %1744 = vst [vmem:[%s2798_s20 + $0x170] sm:$0xff] %v1628_v38  ;;  %v1631_v63 = vadd.f32 %v2229_v60, %v2794_v6  ;;  %v1622_v24 = vpop.f32.mrb[79].mxu0 }
 0x307   : > { %1742 = vst [vmem:[%s2798_s20 + $0x160] sm:$0xff] %v1620_v32  ;;  %v1623_v27 = vadd.f32 %v2794_v6, %v1622_v24 }
 0x308   : > { %1745 = vst [vmem:[%s2798_s20 + $0x178] sm:$0xff] %v1631_v63 }
 0x309   : > { %1743 = vst [vmem:[%s2798_s20 + $0x168] sm:$0xff] %v1623_v27 }
 0x30b   : > { %v2232_v55 = vpop.f32.mrb[80].mxu0 }
 0x30c   : > { %v1644_v58 = vadd.f32 %v2232_v55, %v2794_v6  ;;  %v1635_v21 = vpop.f32.mrb[81].mxu0 }
 0x30d   : > { %v1636_v25 = vadd.f32 %v2794_v6, %v1635_v21  ;;  %v2233_v39 = vpop.f32.mrb[82].mxu0 }
 0x30e   : > { %1748 = vst [vmem:[%s2798_s20 + $0x190] sm:$0xff] %v1644_v58  ;;  %v1647_v40 = vadd.f32 %v2233_v39, %v2794_v6  ;;  %v1638_v41 = vpop.f32.mrb[83].mxu0 }
 0x30f   : > { %1746 = vst [vmem:[%s2798_s20 + $0x180] sm:$0xff] %v1636_v25  ;;  %v1639_v43 = vadd.f32 %v2794_v6, %v1638_v41 }
 0x310   : > { %1749 = vst [vmem:[%s2798_s20 + $0x198] sm:$0xff] %v1647_v40 }
 0x311   : > { %1747 = vst [vmem:[%s2798_s20 + $0x188] sm:$0xff] %v1639_v43 }
 0x313   : > { %v2236_v44 = vpop.f32.mrb[84].mxu0 }
 0x314   : > { %v1660_v45 = vadd.f32 %v2236_v44, %v2794_v6  ;;  %v1651_v46 = vpop.f32.mrb[85].mxu0 }
 0x315   : > { %v1652_v47 = vadd.f32 %v2794_v6, %v1651_v46  ;;  %v2237_v48 = vpop.f32.mrb[86].mxu0 }
 0x316   : > { %1752 = vst [vmem:[%s2798_s20 + $0x1b0] sm:$0xff] %v1660_v45  ;;  %v1663_v49 = vadd.f32 %v2237_v48, %v2794_v6  ;;  %v1654_v50 = vpop.f32.mrb[87].mxu0 }
 0x317   : > { %1750 = vst [vmem:[%s2798_s20 + $0x1a0] sm:$0xff] %v1652_v47  ;;  %v1655_v51 = vadd.f32 %v2794_v6, %v1654_v50 }
 0x318   : > { %1753 = vst [vmem:[%s2798_s20 + $0x1b8] sm:$0xff] %v1663_v49 }
 0x319   : > { %1751 = vst [vmem:[%s2798_s20 + $0x1a8] sm:$0xff] %v1655_v51 }
 0x31b   : > { %v2240_v52 = vpop.f32.mrb[88].mxu0 }
 0x31c   : > { %v1676_v53 = vadd.f32 %v2240_v52, %v2794_v6  ;;  %v1667_v54 = vpop.f32.mrb[89].mxu0 }
 0x31d   : > { %v1668_v56 = vadd.f32 %v2794_v6, %v1667_v54  ;;  %v2241_v57 = vpop.f32.mrb[90].mxu0 }
 0x31e   : > { %1756 = vst [vmem:[%s2798_s20 + $0x1d0] sm:$0xff] %v1676_v53  ;;  %v1679_v59 = vadd.f32 %v2241_v57, %v2794_v6  ;;  %v1670_v61 = vpop.f32.mrb[91].mxu0 }
 0x31f   : > { %1754 = vst [vmem:[%s2798_s20 + $0x1c0] sm:$0xff] %v1668_v56  ;;  %v1671_v62 = vadd.f32 %v2794_v6, %v1670_v61 }
 0x320   : > { %1757 = vst [vmem:[%s2798_s20 + $0x1d8] sm:$0xff] %v1679_v59 }
 0x321   : > { %1755 = vst [vmem:[%s2798_s20 + $0x1c8] sm:$0xff] %v1671_v62 }
 0x323   : > { %v2244_v0 = vpop.f32.mrb[92].mxu0 }
 0x324   : > { %v1692_v1 = vadd.f32 %v2244_v0, %v2794_v6  ;;  %v1683_v2 = vpop.f32.mrb[93].mxu0 }
 0x325   : > { %v1684_v3 = vadd.f32 %v2794_v6, %v1683_v2  ;;  %v2245_v4 = vpop.f32.mrb[94].mxu0 }
 0x326   : > { %1760 = vst [vmem:[%s2798_s20 + $0x1f0] sm:$0xff] %v1692_v1  ;;  %v1695_v5 = vadd.f32 %v2245_v4, %v2794_v6  ;;  %v1686_v7 = vpop.f32.mrb[95].mxu0 }
 0x327   : > { %1758 = vst [vmem:[%s2798_s20 + $0x1e0] sm:$0xff] %v1684_v3  ;;  %v1687_v8 = vadd.f32 %v2794_v6, %v1686_v7 }
 0x328   : > { %1761 = vst [vmem:[%s2798_s20 + $0x1f8] sm:$0xff] %v1695_v5 }
 0x329   : > { %1759 = vst [vmem:[%s2798_s20 + $0x1e8] sm:$0xff] %v1687_v8 }
 0x32a   : > { %2322 = shalt.err (!%p2319_p3)
}
 0x32b   : > { %s2323_s16 = scalar_lea.hbm %s2927_s9, 8192  ;;  %s2327_s19 = scalar_lea.hbm %s2985_s7, 16384 }
 0x32c   : > { %p2324_p4 = scmp.ne.s32.totalorder %s2927_s9, %s2323_s16  ;;  %p2328_p9 = scmp.lt.u32.totalorder %s2927_s9, %s2985_s7 }
 0x32d   : > { %p2329_p10 = scmp.lt.u32.totalorder %s2327_s19, %s2323_s16  ;;  %p2331_p12 = scmp.lt.u32.totalorder %s2323_s16, %s2927_s9 }
 0x32e   : > { %p2325_p7 = pnand %p2324_p4, %p2454_p5 }
 0x32f   : > { %p2330_p11 = por %p2329_p10, %p2328_p9 }
 0x330   : > { %p2326_p8 = pneg %p2325_p7 }
 0x331   : > { %p2332_p13 = por %p2331_p12, %p2330_p11 }
 0x333   : > { %p2333_p0 = pnand %p2332_p13, %p2326_p8 }
 0x335   : > { %2336 = shalt.err (!%p2333_p0)
}
 0x336   : > { %s2374_s29 = smov 128   ;;  %s2375_s8 = smov 8  }
 0x337   : > { %2250 = dma.vmem_to_hbm [thread:$0]  (%p2454_p5), %s2929_s22, 8192, %s2927_s9, %s2937_s28, %s2374_s29, %s2374_s29, %s2375_s8  }
 0x338 PF: > { %p2256_p1 = scmp.ge.s32.totalorder %s2371_s27, 2  ;;  %s1791_s23 = sand.u32 1, %s2359_s24  }
 0x339   : > { %s1792_s13 = scalar_lea.sflag [#allocation3], %s1791_s23 }
 0x33a   : > { %p2253_p2 = pnand %p2256_p1, %p2458_p6 }
 0x33c   : > { %2354 = dma.done.wait (!%p2253_p2), %s1792_s13, 8192  }
 0x33d   : > { %2356 = vsyncadd (!%p2253_p2), %s1792_s13, 4294959104  ;;  %p17_p3 = scmp.ge.s32.totalorder %s2441_s30, 4   ;;  %s2988_s24 = smov %s2363_s25 }
 0x33e   : > { %s2989_s25 = smov %s2367_s26  ;;  %s2990_s26 = smov %s2452_s10 }
 0x33f   : > { %s2991_s27 = smov %s2441_s30  ;;  %19 = sbr.rel (!%p17_p3) target bundleno = 3 (0x3), region = 83 }
 0x346   :  { %1797 = vsyncpa [#allocation3], 1 }
 0x347   :  { %1799 = vsyncpa [#allocation3 + $0x1], 1 }

</bundles_post_ra>
